<compile_context>
chip_gen: v6e
topology: v6e:2x2x1
jax: 0.10.0
libtpu: 0.0.40
codegen_flags: <defaults>
</compile_context>

<pallas_src>
import functools
import numpy as np
import jax
import jax.numpy as jnp
from jax import lax
from jax.experimental import pallas as pl
from jax.experimental.pallas import tpu as pltpu


# ----------------------------------------------------------------------------
# Glue (plain JAX): rectangle extraction from landmarks (tiny scalar math).
# ----------------------------------------------------------------------------
def extract_landmark_rectangles(landmark, image_size, resize_rate, ratio):
    """landmark: (B, T, 10) float32 -> int32 rectangles (B, T, 4, 4) in feat coords."""
    eyes_mid_x = (landmark[..., 0] + landmark[..., 2]) / 2.0
    eyes_mid_y = landmark[..., 5]
    eyes_mid_x_res = image_size - eyes_mid_x
    eyes_min = jnp.minimum(jnp.minimum(eyes_mid_x, eyes_mid_y), eyes_mid_x_res)

    r0 = jnp.stack([eyes_mid_x - eyes_min, eyes_mid_y - eyes_min,
                    eyes_mid_x, eyes_mid_y], axis=-1)
    r1 = jnp.stack([eyes_mid_x, eyes_mid_y - eyes_min,
                    eyes_mid_x + eyes_min, eyes_mid_y], axis=-1)

    mouth_mid_x = (landmark[..., 6] + landmark[..., 8]) / 2.0
    m1 = image_size - eyes_mid_y
    m2 = image_size - mouth_mid_x
    mouth_min = jnp.minimum(jnp.minimum(mouth_mid_x, m1), m2)

    r2 = jnp.stack([mouth_mid_x - mouth_min, eyes_mid_y,
                    mouth_mid_x, eyes_mid_y + mouth_min], axis=-1)
    r3 = jnp.stack([mouth_mid_x, eyes_mid_y,
                    mouth_mid_x + mouth_min, eyes_mid_y + mouth_min], axis=-1)

    rects = jnp.stack([r0, r1, r2, r3], axis=2)  # (B, T, 4, 4) float

    if ratio is not None:
        bound = int(np.round(image_size * ratio))
        special = (eyes_min <= bound) | (mouth_min <= bound)        # (B, T) bool
        special = special[..., None, None]
        half = image_size // 2
        fixed = jnp.array([[0, 0, half, half],
                           [half, 0, image_size, half],
                           [0, half, half, image_size],
                           [half, half, image_size, image_size]], dtype=jnp.float32)
        rects = rects * (~special) + fixed * special

    final = jnp.round(rects / resize_rate).astype(jnp.int32)
    return final


# ----------------------------------------------------------------------------
# Pallas kernel: masked "ignore padding" GAP for a batch of G (b,t) pairs,
# plus the add of the precomputed location features.  VPU/XLU only (no MXU).
# ----------------------------------------------------------------------------
def _sfe_kernel(rect_ref, gx_ref, gy_ref, feat_ref, loc_ref, out_ref, *, eps):
    G, C, HW = feat_ref.shape

    rect = rect_ref[...]                         # (G, 16) int32 (4 rects x 4 coords)
    gx = gx_ref[...]                             # (1, HW) int32
    gy = gy_ref[...]                             # (1, HW) int32
    feat = feat_ref[...].astype(jnp.float32)     # cast native dtype -> f32 once

    parts = []
    for n in range(4):                           # unrolled over the 4 rectangles
        x1 = rect[:, 4 * n + 0:4 * n + 1]        # (G, 1)
        y1 = rect[:, 4 * n + 1:4 * n + 2]
        x2 = rect[:, 4 * n + 2:4 * n + 3]
        y2 = rect[:, 4 * n + 3:4 * n + 4]
        # Sublane-dense (G, HW) mask: pure VALU compares/ANDs.
        m = ((gx >= x1) & (gx < x2) & (gy >= y1) & (gy < y2)).astype(jnp.float32)
        # VPU broadcast-multiply + XLU lane reduce over the spatial axis.
        pool = jnp.sum(feat * m[:, None, :], axis=-1)            # (G, C)
        cnt = jnp.sum(m, axis=-1, keepdims=True)                 # (G, 1)
        # adaptive_avg_pool2d "ignore padding": sum / (count + eps*HW)
        denom = cnt + eps * HW
        inv = pl.reciprocal(denom, approx=True)                  # EUP slot
        inv = inv * (2.0 - denom * inv)                          # 1 Newton step (f32 acc.)
        parts.append(pool * inv)

    # Single store of the (G, 4C) slab (+ precomputed location features).
    out_ref[...] = jnp.concatenate(parts, axis=-1) + loc_ref[...]


def _round_up(x, m):
    return ((x + m - 1) // m) * m


def symmetric_face_embedding(feat, landmarks, w1, w2, *,
                             image_size, feat_size, ratio, eps=1e-9,
                             block_bt=None, min_steps=4):
    """feat: (B,T,C,H,W); landmarks: (B,T,10) f32; returns (B,T,4,C) f32."""
    B, T, C, H, W = feat.shape
    BT = B * T
    HW = H * W
    fourC = 4 * C
    resize_rate = image_size // feat_size

    # --- tiny scalar / matmul pre-work stays in XLA (not worth a kernel) ---
    rects = extract_landmark_rectangles(landmarks, image_size, resize_rate, ratio)
    rect_flat = rects.reshape(BT, 16)                       # flat 2-D int32

    feat_flat = feat.reshape(BT, C, HW)                     # NATIVE dtype (no upcast)

    locations = jnp.concatenate([landmarks[..., :4], landmarks[..., 6:]], axis=-1)
    loc2 = locations.reshape(BT, 8).astype(jnp.float32)
    # Location projector hoisted out of the kernel (dropout = identity at inference).
    loc_feat = jnp.dot(jax.nn.gelu(jnp.dot(loc2, w1), approximate=False), w2)  # (BT, 4C)

    # Precomputed pixel-index grids (no per-lane // and % inside the kernel).
    gy = (jnp.arange(HW, dtype=jnp.int32) // W).reshape(1, HW)
    gx = (jnp.arange(HW, dtype=jnp.int32) % W).reshape(1, HW)

    # --- generation-aware block sizing --------------------------------------
    per_pair_bytes = C * HW * feat_flat.dtype.itemsize
    try:
        info = pltpu.get_tpu_info()
        vmem_bytes = int(getattr(info, "vmem_capacity_bytes", 64 << 20))
    except Exception:
        vmem_bytes = 64 << 20
    if block_bt is not None:
        G = max(8, (block_bt // 8) * 8)
    else:
        # ~4 MiB feat blocks on 128 MiB-VMEM chips (v5e/v6e), ~2 MiB on v7x (64 MiB).
        target = (4 << 20) if vmem_bytes >= (96 << 20) else (2 << 20)
        G = max(8, (target // per_pair_bytes) // 8 * 8)
    # Never collapse the grid to (1,): keep >= min_steps steps when BT allows.
    g_for_steps = max(8, _round_up(-(-BT // min_steps), 8))
    G = min(G, g_for_steps)
    steps = -(-BT // G)
    if steps > 1 and steps % 2:
        steps += 1                        # even split across v7x TensorCores
    BT_pad = steps * G

    if BT_pad != BT:
        pad = BT_pad - BT
        rect_flat = jnp.pad(rect_flat, ((0, pad), (0, 0)))
        feat_flat = jnp.pad(feat_flat, ((0, pad), (0, 0), (0, 0)))
        loc_feat = jnp.pad(loc_feat, ((0, pad), (0, 0)))

    # VMEM budget: double-buffered blocks + slack, capped below physical VMEM.
    block_bytes = (G * C * HW * feat_flat.dtype.itemsize        # feat block
                   + G * 128 * 4                                # rect (lane-padded)
                   + 2 * G * max(fourC, 128) * 4)               # loc + out blocks
    vmem_limit = int(min(max(2 * block_bytes + (4 << 20), 32 << 20),
                         (vmem_bytes * 3) // 4))

    kernel = functools.partial(_sfe_kernel, eps=eps)

    out = pl.pallas_call(
        kernel,
        out_shape=jax.ShapeDtypeStruct((BT_pad, fourC), jnp.float32),
        grid_spec=pltpu.PrefetchScalarGridSpec(
            num_scalar_prefetch=0,
            grid=(steps,),
            in_specs=[
                pl.BlockSpec((G, 16), lambda i: (i, 0)),        # rectangles (flat)
                pl.BlockSpec((1, HW), lambda i: (0, 0)),        # gx grid
                pl.BlockSpec((1, HW), lambda i: (0, 0)),        # gy grid
                pl.BlockSpec((G, C, HW), lambda i: (i, 0, 0)),  # features (native dtype)
                pl.BlockSpec((G, fourC), lambda i: (i, 0)),     # location feats
            ],
            out_specs=pl.BlockSpec((G, fourC), lambda i: (i, 0)),
        ),
        compiler_params=pltpu.CompilerParams(
            dimension_semantics=("parallel",),                  # megacore / TC split
            vmem_limit_bytes=vmem_limit),
    )(rect_flat, gx, gy, feat_flat, loc_feat)

    return out[:BT].reshape(B, T, 4, C)


# ----------------------------------------------------------------------------
# Pure-JAX reference (for correctness check only).
# ----------------------------------------------------------------------------
def reference(feat, landmarks, w1, w2, *, image_size, feat_size, ratio, eps=1e-9):
    B, T, C, H, W = feat.shape
    resize_rate = image_size // feat_size
    rects = extract_landmark_rectangles(landmarks, image_size, resize_rate, ratio)
    x1 = rects[..., 0][..., None, None]
    y1 = rects[..., 1][..., None, None]
    x2 = rects[..., 2][..., None, None]
    y2 = rects[..., 3][..., None, None]
    gy, gx = jnp.meshgrid(jnp.arange(H), jnp.arange(W), indexing='ij')
    mask = ((gx >= x1) & (gx < x2) & (gy >= y1) & (gy < y2)).astype(jnp.float32)  # (B,T,4,H,W)
    pool_sum = jnp.einsum('btchw,btnhw->btnc', feat.astype(jnp.float32), mask,
                          precision=lax.Precision.HIGHEST) / (H * W)
    mask_mean = mask.mean(axis=(-1, -2))[..., None]
    appearance = pool_sum / (mask_mean + eps)
    loc = jnp.concatenate([landmarks[..., :4], landmarks[..., 6:]], axis=-1)
    h = jax.nn.gelu(loc @ w1, approximate=False) @ w2
    loc_feat = h.reshape(B, T, 4, C)
    return appearance + loc_feat


if __name__ == "__main__":
    # Module hyper-params (small, consistent with the forward pass).
    image_size = 64
    feat_size = 16
    feat_ch = 8          # final_ch == feat_ch
    ratio = 0.05
    # dropout_rate = 0.0 (inference: identity)

    B, T = 2, 16          # BT = 32 -> 4 grid steps of G = 8 pairs each
    C, H, W = feat_ch, feat_size, feat_size

    key = jax.random.PRNGKey(0)
    k_feat, k_lm, k_w1, k_w2 = jax.random.split(key, 4)
    feat = jax.random.normal(k_feat, (B, T, C, H, W), dtype=jnp.float32)
    landmarks = jax.random.uniform(k_lm, (B, T, 10), dtype=jnp.float32,
                                   minval=0.0, maxval=float(image_size))
    # nn.Linear(8, 4C, bias=False) weight is (4C, 8); we store transposed (8, 4C).
    w1 = 0.1 * jax.random.normal(k_w1, (8, 4 * C), dtype=jnp.float32)
    w2 = 0.1 * jax.random.normal(k_w2, (4 * C, 4 * C), dtype=jnp.float32)

    out = symmetric_face_embedding(
        feat, landmarks, w1, w2,
        image_size=image_size, feat_size=feat_size, ratio=ratio)
    out = jax.block_until_ready(out)

    ref = reference(feat, landmarks, w1, w2,
                    image_size=image_size, feat_size=feat_size, ratio=ratio)
    ref = jax.block_until_ready(ref)

    assert out.shape == (B, T, 4, C)
    # Tolerance covers the EUP approx-reciprocal (+1 Newton step) and reduce-order diffs.
    np.testing.assert_allclose(np.asarray(out), np.asarray(ref), rtol=1e-3, atol=1e-3)
    print("KERNEL_OK")
</pallas_src>

<mosaic_0001>
module attributes {stable_mosaic.version = 11 : i64} {
  func.func @_sfe_kernel(%arg0: i32, %arg1: memref<8x16xi32, #tpu.memory_space<vmem>>, %arg2: memref<1x256xi32, #tpu.memory_space<vmem>>, %arg3: memref<1x256xi32, #tpu.memory_space<vmem>>, %arg4: memref<8x8x256xf32, #tpu.memory_space<vmem>>, %arg5: memref<8x32xf32, #tpu.memory_space<vmem>>, %arg6: memref<8x32xf32, #tpu.memory_space<vmem>>) attributes {dimension_semantics = [#tpu.dimension_semantics<parallel>], iteration_bounds = array<i64: 4>, scalar_prefetch = 0 : i64, scratch_operands = 0 : i64, tpu.core_type = #tpu.core_type<tc>, window_params = [{transform_indices = @transform_0, window_bounds = array<i64: 8, 16>}, {pipeline_mode = #tpu.pipeline_mode<synchronous>, transform_indices = @transform_1, window_bounds = array<i64: 1, 256>}, {pipeline_mode = #tpu.pipeline_mode<synchronous>, transform_indices = @transform_2, window_bounds = array<i64: 1, 256>}, {transform_indices = @transform_3, window_bounds = array<i64: 8, 8, 256>}, {transform_indices = @transform_4, window_bounds = array<i64: 8, 32>}, {transform_indices = @transform_5, window_bounds = array<i64: 8, 32>}]} {
    %c0 = arith.constant 0 : index
    %c0_0 = arith.constant 0 : index
    %0 = vector.load %arg1[%c0, %c0_0] : memref<8x16xi32, #tpu.memory_space<vmem>>, vector<8x16xi32>
    %c0_1 = arith.constant 0 : index
    %c0_2 = arith.constant 0 : index
    %1 = vector.load %arg2[%c0_1, %c0_2] : memref<1x256xi32, #tpu.memory_space<vmem>>, vector<1x256xi32>
    %c0_3 = arith.constant 0 : index
    %c0_4 = arith.constant 0 : index
    %2 = vector.load %arg3[%c0_3, %c0_4] : memref<1x256xi32, #tpu.memory_space<vmem>>, vector<1x256xi32>
    %c0_5 = arith.constant 0 : index
    %c0_6 = arith.constant 0 : index
    %c0_7 = arith.constant 0 : index
    %3 = vector.load %arg4[%c0_5, %c0_6, %c0_7] : memref<8x8x256xf32, #tpu.memory_space<vmem>>, vector<8x8x256xf32>
    %4 = vector.extract_strided_slice %0 {offsets = [0, 0], sizes = [8, 1], strides = [1, 1]} : vector<8x16xi32> to vector<8x1xi32>
    %5 = vector.extract_strided_slice %0 {offsets = [0, 1], sizes = [8, 1], strides = [1, 1]} : vector<8x16xi32> to vector<8x1xi32>
    %6 = vector.extract_strided_slice %0 {offsets = [0, 2], sizes = [8, 1], strides = [1, 1]} : vector<8x16xi32> to vector<8x1xi32>
    %7 = vector.extract_strided_slice %0 {offsets = [0, 3], sizes = [8, 1], strides = [1, 1]} : vector<8x16xi32> to vector<8x1xi32>
    %8 = vector.broadcast %1 : vector<1x256xi32> to vector<8x256xi32>
    %9 = vector.broadcast %4 : vector<8x1xi32> to vector<8x256xi32>
    %10 = arith.cmpi sge, %8, %9 : vector<8x256xi32>
    %11 = vector.broadcast %1 : vector<1x256xi32> to vector<8x256xi32>
    %12 = vector.broadcast %6 : vector<8x1xi32> to vector<8x256xi32>
    %13 = arith.cmpi slt, %11, %12 : vector<8x256xi32>
    %14 = arith.andi %10, %13 : vector<8x256xi1>
    %15 = vector.broadcast %2 : vector<1x256xi32> to vector<8x256xi32>
    %16 = vector.broadcast %5 : vector<8x1xi32> to vector<8x256xi32>
    %17 = arith.cmpi sge, %15, %16 : vector<8x256xi32>
    %18 = arith.andi %14, %17 : vector<8x256xi1>
    %19 = vector.broadcast %2 : vector<1x256xi32> to vector<8x256xi32>
    %20 = vector.broadcast %7 : vector<8x1xi32> to vector<8x256xi32>
    %21 = arith.cmpi slt, %19, %20 : vector<8x256xi32>
    %22 = arith.andi %18, %21 : vector<8x256xi1>
    %23 = arith.extui %22 : vector<8x256xi1> to vector<8x256xi32>
    %24 = arith.sitofp %23 : vector<8x256xi32> to vector<8x256xf32>
    %25 = vector.shape_cast %24 : vector<8x256xf32> to vector<8x1x256xf32>
    %26 = vector.broadcast %25 : vector<8x1x256xf32> to vector<8x8x256xf32>
    %27 = arith.mulf %3, %26 : vector<8x8x256xf32>
    %cst = arith.constant dense<0.000000e+00> : vector<8x8xf32>
    %28 = vector.multi_reduction <add>, %27, %cst [2] : vector<8x8x256xf32> to vector<8x8xf32>
    %cst_8 = arith.constant dense<0.000000e+00> : vector<8xf32>
    %29 = vector.multi_reduction <add>, %24, %cst_8 [1] : vector<8x256xf32> to vector<8xf32>
    %30 = vector.shape_cast %29 : vector<8xf32> to vector<8x1xf32>
    %cst_9 = arith.constant 2.560000e-07 : f32
    %31 = vector.broadcast %cst_9 : f32 to vector<8x1xf32>
    %32 = arith.addf %30, %31 : vector<8x1xf32>
    %33 = tpu.reciprocal %32 {approx = true} : vector<8x1xf32> -> vector<8x1xf32>
    %34 = arith.mulf %32, %33 : vector<8x1xf32>
    %cst_10 = arith.constant 2.000000e+00 : f32
    %35 = vector.broadcast %cst_10 : f32 to vector<8x1xf32>
    %36 = arith.subf %35, %34 : vector<8x1xf32>
    %37 = arith.mulf %33, %36 : vector<8x1xf32>
    %38 = vector.broadcast %37 : vector<8x1xf32> to vector<8x8xf32>
    %39 = arith.mulf %28, %38 : vector<8x8xf32>
    %40 = vector.extract_strided_slice %0 {offsets = [0, 4], sizes = [8, 1], strides = [1, 1]} : vector<8x16xi32> to vector<8x1xi32>
    %41 = vector.extract_strided_slice %0 {offsets = [0, 5], sizes = [8, 1], strides = [1, 1]} : vector<8x16xi32> to vector<8x1xi32>
    %42 = vector.extract_strided_slice %0 {offsets = [0, 6], sizes = [8, 1], strides = [1, 1]} : vector<8x16xi32> to vector<8x1xi32>
    %43 = vector.extract_strided_slice %0 {offsets = [0, 7], sizes = [8, 1], strides = [1, 1]} : vector<8x16xi32> to vector<8x1xi32>
    %44 = vector.broadcast %1 : vector<1x256xi32> to vector<8x256xi32>
    %45 = vector.broadcast %40 : vector<8x1xi32> to vector<8x256xi32>
    %46 = arith.cmpi sge, %44, %45 : vector<8x256xi32>
    %47 = vector.broadcast %1 : vector<1x256xi32> to vector<8x256xi32>
    %48 = vector.broadcast %42 : vector<8x1xi32> to vector<8x256xi32>
    %49 = arith.cmpi slt, %47, %48 : vector<8x256xi32>
    %50 = arith.andi %46, %49 : vector<8x256xi1>
    %51 = vector.broadcast %2 : vector<1x256xi32> to vector<8x256xi32>
    %52 = vector.broadcast %41 : vector<8x1xi32> to vector<8x256xi32>
    %53 = arith.cmpi sge, %51, %52 : vector<8x256xi32>
    %54 = arith.andi %50, %53 : vector<8x256xi1>
    %55 = vector.broadcast %2 : vector<1x256xi32> to vector<8x256xi32>
    %56 = vector.broadcast %43 : vector<8x1xi32> to vector<8x256xi32>
    %57 = arith.cmpi slt, %55, %56 : vector<8x256xi32>
    %58 = arith.andi %54, %57 : vector<8x256xi1>
    %59 = arith.extui %58 : vector<8x256xi1> to vector<8x256xi32>
    %60 = arith.sitofp %59 : vector<8x256xi32> to vector<8x256xf32>
    %61 = vector.shape_cast %60 : vector<8x256xf32> to vector<8x1x256xf32>
    %62 = vector.broadcast %61 : vector<8x1x256xf32> to vector<8x8x256xf32>
    %63 = arith.mulf %3, %62 : vector<8x8x256xf32>
    %cst_11 = arith.constant dense<0.000000e+00> : vector<8x8xf32>
    %64 = vector.multi_reduction <add>, %63, %cst_11 [2] : vector<8x8x256xf32> to vector<8x8xf32>
    %cst_12 = arith.constant dense<0.000000e+00> : vector<8xf32>
    %65 = vector.multi_reduction <add>, %60, %cst_12 [1] : vector<8x256xf32> to vector<8xf32>
    %66 = vector.shape_cast %65 : vector<8xf32> to vector<8x1xf32>
    %cst_13 = arith.constant 2.560000e-07 : f32
    %67 = vector.broadcast %cst_13 : f32 to vector<8x1xf32>
    %68 = arith.addf %66, %67 : vector<8x1xf32>
    %69 = tpu.reciprocal %68 {approx = true} : vector<8x1xf32> -> vector<8x1xf32>
    %70 = arith.mulf %68, %69 : vector<8x1xf32>
    %cst_14 = arith.constant 2.000000e+00 : f32
    %71 = vector.broadcast %cst_14 : f32 to vector<8x1xf32>
    %72 = arith.subf %71, %70 : vector<8x1xf32>
    %73 = arith.mulf %69, %72 : vector<8x1xf32>
    %74 = vector.broadcast %73 : vector<8x1xf32> to vector<8x8xf32>
    %75 = arith.mulf %64, %74 : vector<8x8xf32>
    %76 = vector.extract_strided_slice %0 {offsets = [0, 8], sizes = [8, 1], strides = [1, 1]} : vector<8x16xi32> to vector<8x1xi32>
    %77 = vector.extract_strided_slice %0 {offsets = [0, 9], sizes = [8, 1], strides = [1, 1]} : vector<8x16xi32> to vector<8x1xi32>
    %78 = vector.extract_strided_slice %0 {offsets = [0, 10], sizes = [8, 1], strides = [1, 1]} : vector<8x16xi32> to vector<8x1xi32>
    %79 = vector.extract_strided_slice %0 {offsets = [0, 11], sizes = [8, 1], strides = [1, 1]} : vector<8x16xi32> to vector<8x1xi32>
    %80 = vector.broadcast %1 : vector<1x256xi32> to vector<8x256xi32>
    %81 = vector.broadcast %76 : vector<8x1xi32> to vector<8x256xi32>
    %82 = arith.cmpi sge, %80, %81 : vector<8x256xi32>
    %83 = vector.broadcast %1 : vector<1x256xi32> to vector<8x256xi32>
    %84 = vector.broadcast %78 : vector<8x1xi32> to vector<8x256xi32>
    %85 = arith.cmpi slt, %83, %84 : vector<8x256xi32>
    %86 = arith.andi %82, %85 : vector<8x256xi1>
    %87 = vector.broadcast %2 : vector<1x256xi32> to vector<8x256xi32>
    %88 = vector.broadcast %77 : vector<8x1xi32> to vector<8x256xi32>
    %89 = arith.cmpi sge, %87, %88 : vector<8x256xi32>
    %90 = arith.andi %86, %89 : vector<8x256xi1>
    %91 = vector.broadcast %2 : vector<1x256xi32> to vector<8x256xi32>
    %92 = vector.broadcast %79 : vector<8x1xi32> to vector<8x256xi32>
    %93 = arith.cmpi slt, %91, %92 : vector<8x256xi32>
    %94 = arith.andi %90, %93 : vector<8x256xi1>
    %95 = arith.extui %94 : vector<8x256xi1> to vector<8x256xi32>
    %96 = arith.sitofp %95 : vector<8x256xi32> to vector<8x256xf32>
    %97 = vector.shape_cast %96 : vector<8x256xf32> to vector<8x1x256xf32>
    %98 = vector.broadcast %97 : vector<8x1x256xf32> to vector<8x8x256xf32>
    %99 = arith.mulf %3, %98 : vector<8x8x256xf32>
    %cst_15 = arith.constant dense<0.000000e+00> : vector<8x8xf32>
    %100 = vector.multi_reduction <add>, %99, %cst_15 [2] : vector<8x8x256xf32> to vector<8x8xf32>
    %cst_16 = arith.constant dense<0.000000e+00> : vector<8xf32>
    %101 = vector.multi_reduction <add>, %96, %cst_16 [1] : vector<8x256xf32> to vector<8xf32>
    %102 = vector.shape_cast %101 : vector<8xf32> to vector<8x1xf32>
    %cst_17 = arith.constant 2.560000e-07 : f32
    %103 = vector.broadcast %cst_17 : f32 to vector<8x1xf32>
    %104 = arith.addf %102, %103 : vector<8x1xf32>
    %105 = tpu.reciprocal %104 {approx = true} : vector<8x1xf32> -> vector<8x1xf32>
    %106 = arith.mulf %104, %105 : vector<8x1xf32>
    %cst_18 = arith.constant 2.000000e+00 : f32
    %107 = vector.broadcast %cst_18 : f32 to vector<8x1xf32>
    %108 = arith.subf %107, %106 : vector<8x1xf32>
    %109 = arith.mulf %105, %108 : vector<8x1xf32>
    %110 = vector.broadcast %109 : vector<8x1xf32> to vector<8x8xf32>
    %111 = arith.mulf %100, %110 : vector<8x8xf32>
    %112 = vector.extract_strided_slice %0 {offsets = [0, 12], sizes = [8, 1], strides = [1, 1]} : vector<8x16xi32> to vector<8x1xi32>
    %113 = vector.extract_strided_slice %0 {offsets = [0, 13], sizes = [8, 1], strides = [1, 1]} : vector<8x16xi32> to vector<8x1xi32>
    %114 = vector.extract_strided_slice %0 {offsets = [0, 14], sizes = [8, 1], strides = [1, 1]} : vector<8x16xi32> to vector<8x1xi32>
    %115 = vector.extract_strided_slice %0 {offsets = [0, 15], sizes = [8, 1], strides = [1, 1]} : vector<8x16xi32> to vector<8x1xi32>
    %116 = vector.broadcast %1 : vector<1x256xi32> to vector<8x256xi32>
    %117 = vector.broadcast %112 : vector<8x1xi32> to vector<8x256xi32>
    %118 = arith.cmpi sge, %116, %117 : vector<8x256xi32>
    %119 = vector.broadcast %1 : vector<1x256xi32> to vector<8x256xi32>
    %120 = vector.broadcast %114 : vector<8x1xi32> to vector<8x256xi32>
    %121 = arith.cmpi slt, %119, %120 : vector<8x256xi32>
    %122 = arith.andi %118, %121 : vector<8x256xi1>
    %123 = vector.broadcast %2 : vector<1x256xi32> to vector<8x256xi32>
    %124 = vector.broadcast %113 : vector<8x1xi32> to vector<8x256xi32>
    %125 = arith.cmpi sge, %123, %124 : vector<8x256xi32>
    %126 = arith.andi %122, %125 : vector<8x256xi1>
    %127 = vector.broadcast %2 : vector<1x256xi32> to vector<8x256xi32>
    %128 = vector.broadcast %115 : vector<8x1xi32> to vector<8x256xi32>
    %129 = arith.cmpi slt, %127, %128 : vector<8x256xi32>
    %130 = arith.andi %126, %129 : vector<8x256xi1>
    %131 = arith.extui %130 : vector<8x256xi1> to vector<8x256xi32>
    %132 = arith.sitofp %131 : vector<8x256xi32> to vector<8x256xf32>
    %133 = vector.shape_cast %132 : vector<8x256xf32> to vector<8x1x256xf32>
    %134 = vector.broadcast %133 : vector<8x1x256xf32> to vector<8x8x256xf32>
    %135 = arith.mulf %3, %134 : vector<8x8x256xf32>
    %cst_19 = arith.constant dense<0.000000e+00> : vector<8x8xf32>
    %136 = vector.multi_reduction <add>, %135, %cst_19 [2] : vector<8x8x256xf32> to vector<8x8xf32>
    %cst_20 = arith.constant dense<0.000000e+00> : vector<8xf32>
    %137 = vector.multi_reduction <add>, %132, %cst_20 [1] : vector<8x256xf32> to vector<8xf32>
    %138 = vector.shape_cast %137 : vector<8xf32> to vector<8x1xf32>
    %cst_21 = arith.constant 2.560000e-07 : f32
    %139 = vector.broadcast %cst_21 : f32 to vector<8x1xf32>
    %140 = arith.addf %138, %139 : vector<8x1xf32>
    %141 = tpu.reciprocal %140 {approx = true} : vector<8x1xf32> -> vector<8x1xf32>
    %142 = arith.mulf %140, %141 : vector<8x1xf32>
    %cst_22 = arith.constant 2.000000e+00 : f32
    %143 = vector.broadcast %cst_22 : f32 to vector<8x1xf32>
    %144 = arith.subf %143, %142 : vector<8x1xf32>
    %145 = arith.mulf %141, %144 : vector<8x1xf32>
    %146 = vector.broadcast %145 : vector<8x1xf32> to vector<8x8xf32>
    %147 = arith.mulf %136, %146 : vector<8x8xf32>
    %148 = tpu.concatenate %39, %75, %111, %147 in 1 : vector<8x8xf32>, vector<8x8xf32>, vector<8x8xf32>, vector<8x8xf32> -> vector<8x32xf32>
    %c0_23 = arith.constant 0 : index
    %c0_24 = arith.constant 0 : index
    %149 = vector.load %arg5[%c0_23, %c0_24] : memref<8x32xf32, #tpu.memory_space<vmem>>, vector<8x32xf32>
    %150 = arith.addf %148, %149 : vector<8x32xf32>
    %c0_25 = arith.constant 0 : index
    %c0_26 = arith.constant 0 : index
    %151 = vector.load %arg6[%c0_25, %c0_26] : memref<8x32xf32, #tpu.memory_space<vmem>>, vector<8x32xf32>
    tpu.vector_store %arg6[%c0_25, %c0_26], %150 {strides = array<i32>} : memref<8x32xf32, #tpu.memory_space<vmem>>, vector<8x32xf32>,
    return
  }
  func.func @transform_0(%arg0: i32) -> (i32, i32) {
    %c0_i32 = arith.constant 0 : i32
    %c0_i32_0 = arith.constant 0 : i32
    return %arg0, %c0_i32 : i32, i32
  }
  func.func @transform_1(%arg0: i32) -> (i32, i32) {
    %c0_i32 = arith.constant 0 : i32
    %c0_i32_0 = arith.constant 0 : i32
    %c0_i32_1 = arith.constant 0 : i32
    return %c0_i32, %c0_i32_0 : i32, i32
  }
  func.func @transform_2(%arg0: i32) -> (i32, i32) {
    %c0_i32 = arith.constant 0 : i32
    %c0_i32_0 = arith.constant 0 : i32
    %c0_i32_1 = arith.constant 0 : i32
    return %c0_i32, %c0_i32_0 : i32, i32
  }
  func.func @transform_3(%arg0: i32) -> (i32, i32, i32) {
    %c0_i32 = arith.constant 0 : i32
    %c0_i32_0 = arith.constant 0 : i32
    %c0_i32_1 = arith.constant 0 : i32
    return %arg0, %c0_i32, %c0_i32_0 : i32, i32, i32
  }
  func.func @transform_4(%arg0: i32) -> (i32, i32) {
    %c0_i32 = arith.constant 0 : i32
    %c0_i32_0 = arith.constant 0 : i32
    return %arg0, %c0_i32 : i32, i32
  }
  func.func @transform_5(%arg0: i32) -> (i32, i32) {
    %c0_i32 = arith.constant 0 : i32
    %c0_i32_0 = arith.constant 0 : i32
    return %arg0, %c0_i32 : i32, i32
  }
}

</mosaic_0001>

<bundles_post_ra>
// kernel: tpu_custom_call.1
= control target key start
LH: loop header
LB: loop body
LE: loop exit
PB: predicated region body
PF: predicated region fallthrough
CT: control target
= control target key end

     0   :  { %10 = vsyncpa [#allocation3], 0  ;;  %s2711_s0 = inlined_call_operand.vmem [shape: s32[32,16], index: 0, kind: input, shape index: {}]   ;;  %s2712_s1 = inlined_call_operand.vmem [shape: s32[1,256], index: 1, kind: input, shape index: {}]   ;;  %s2713_s2 = inlined_call_operand.vmem [shape: s32[1,256], index: 2, kind: input, shape index: {}]   ;;  %s2714_s3 = inlined_call_operand.hbm [shape: f32[32,8,256], index: 3, kind: input, shape index: {}]   ;;  %s2715_s4 = inlined_call_operand.vmem [shape: f32[32,32], index: 4, kind: input, shape index: {}]   ;;  %s2716_s5 = inlined_call_operand.hbm [shape: f32[32,32], index: 5, kind: output, shape index: {}]  }
   0x1   :  { %12 = vsyncpa [#allocation3 + $0x1], 0 }
   0x2   :  { %13 = vsyncpa [#allocation4], 0 }
   0x3   :  { %15 = vsyncpa [#allocation4 + $0x1], 0  ;;  %s2032_s18 = smov 0   ;;  %s2034_s19 = smov 0  }
   0x4   :  { %s2036_s20 = smov 0   ;;  %s2038_s21 = smov 0  }
   0x5 LB: > { %s2053_s22 = sadd.s32 4294967295, %s1978_s21   ;;  %s1768_s23 = sadd.s32 4294967294, %s1978_s21   ;;  %s1978_s21 = sphi %s2038_s21, %s2749_s21   ;;  %s1974_s20 = sphi %s2036_s20, %s2748_s20   ;;  %s1970_s19 = sphi %s2034_s19, %s2747_s19   ;;  %s1966_s18 = sphi %s2032_s18, %s2746_s18  }
   0x6   : > { %s2057_s24 = sadd.s32 1, %s1978_s21   ;;  %s96_s25 = sadd.s32 1, %s1974_s20 }
   0x7   : > { %s93_s26 = ssub.s32 %s1978_s21, %s2057_s24  ;;  %p103_p0 = scmp.ne.s32.totalorder %s1974_s20, %s1970_s19 }
   0x8   : > { %p94_p1 = scmp.eq.s32.totalorder %s93_s26, 0  ;;  %p104_p2 = scmp.eq.s32.totalorder %s1978_s21, 0 }
   0x9   : > { %p109_p3 = scmp.ne.s32.totalorder %s1970_s19, %s1966_s18  ;;  %p110_p4 = scmp.eq.s32.totalorder %s2053_s22, 0 }
   0xa   : > { %s2069_s27 = scalar_select %p94_p1, %s1974_s20, %s96_s25  }
   0xb   : > { %p2071_p5 = por %p104_p2, %p103_p0  ;;  %p2075_p6 = por %p110_p4, %p109_p3 }
   0xc   : > { %p159_p7 = scmp.eq.s32.totalorder %s2053_s22, 3  ;;  %p165_p8 = scmp.eq.s32.totalorder %s1768_s23, 3 }
   0xd   : > { %s2728_s29 = scalar_select %p2075_p6, 1, 0 }
   0xe   : > { %p1806_p9 = scmp.lt.s32.totalorder %s1978_s21, 4  ;;  %p2081_p10 = por %p159_p7, %p103_p0 }
   0xf   : > { %p2085_p11 = por %p165_p8, %p109_p3  ;;  %s198_s7 = sand.u32 1, %s1974_s20  }
  0x10   : > { %s2729_s30 = scalar_select %p2081_p10, 1, 0 }
  0x11   : > { %s2730_s6 = scalar_select %p2085_p11, 1, 0 }
  0x12   : > { %s1793_s8 = sshll.u32 %s1978_s21, 11  ;;  %s1771_s9 = sshll.u32 %s198_s7, 7 }
  0x13   : > { %s2094_s12 = scalar_lea.hbm %s2714_s3, %s1793_s8  ;;  %s202_s13 = scalar_lea.vmem [#allocation2], %s1771_s9 }
  0x14   : > { %s210_s14 = sshll.u32 %s202_s13, 4  ;;  %p2098_p12 = pnand %p1806_p9, %p2071_p5  ;;  %s2102_s14 = int_to_ptr.vmem [resolvable:$true] %s210_s14 }
  0x15   : > { %s2104_s16 = scalar_lea.sflag [#allocation3], %s198_s7  ;;  %s1886_s17 = scalar_lea.hbm %s2094_s12, 2048 }
  0x16   : > { %p1887_p13 = scmp.ne.s32.totalorder %s2094_s12, %s1886_s17  ;;  %p1888_p0 = pneg %p2098_p12 }
  0x17   : > { %s1891_s26 = scalar_lea.hbm %s2714_s3, 8192  ;;  %p1892_p3 = scmp.lt.s32.totalorder %s2094_s12, %s2714_s3 }
  0x18   : > { %p1889_p1 = pnand %p1888_p0, %p1887_p13  ;;  %p1893_p4 = scmp.lt.s32.totalorder %s1891_s26, %s1886_s17 }
  0x1a   : > { %p1890_p2 = pneg %p1889_p1  ;;  %p1894_p5 = por %p1893_p4, %p1892_p3 }
  0x1c   : > { %p1895_p7 = pnand %p1894_p5, %p1890_p2 }
  0x1e   : > { %1898 = shalt.err (!%p1895_p7)
}
  0x1f   : > { %s1899_s7 = scalar_lea.vmem %s2102_s14, 2048  ;;  %s1980_s9 = smov [#allocation2]  }
  0x20   : > { %p1900_p8 = scmp.ne.s32.totalorder %s2102_s14, %s1899_s7  ;;  %s1904_s10 = sshll.u32 %s1980_s9, 4  ;;  %s1905_s10 = int_to_ptr.vmem [resolvable:$false] %s1904_s10 }
  0x21   : > { %s1906_s11 = scalar_lea.vmem %s1905_s10, 4096  ;;  %p1907_p1 = scmp.lt.s32.totalorder %s2102_s14, %s1905_s10 }
  0x22   : > { %p1902_p9 = pnand %p1900_p8, %p1888_p0  ;;  %p1908_p11 = scmp.lt.s32.totalorder %s1906_s11, %s1899_s7 }
  0x24   : > { %p1903_p13 = pneg %p1902_p9  ;;  %p1909_p10 = por %p1908_p11, %p1907_p1 }
  0x26   : > { %p1910_p6 = pnand %p1909_p10, %p1903_p13 }
  0x28   : > { %1913 = shalt.err (!%p1910_p6)
}
  0x29   : > { %s1981_s13 = smov 256   ;;  %s1982_s17 = smov 16  }
  0x2a   : > { %1801 = dma.hbm_to_vmem [thread:$0]  (!%p2098_p12), %s2094_s12, 2048, %s2102_s14, %s2104_s16, %s1981_s13, %s1981_s13, %s1982_s17  }
  0x2b   : > { %p1775_p0 = scmp.ge.s32.totalorder %s1978_s21, 1  ;;  %p225_p2 = scmp.lt.s32.totalorder %s1978_s21, 5 }
  0x2d   : > { %p226_p3 = pnand %p1775_p0, %p225_p2 }
  0x2f   : > { %229 = sbr.rel (%p226_p3) target bundleno = 906 (0x38a), region = 40 }
  0x34   : > { %s2128_s23 = sand.u32 1, %s1970_s19   ;;  %p2732_p6 = scmp.ne.s32.totalorder %s2728_s29, 0 }
  0x35   : > { %s1776_s25 = sshll.u32 %s2128_s23, 7  ;;  %s232_s26 = scalar_lea.sflag [#allocation3], %s2128_s23 }
  0x36   : > { %s2132_s28 = scalar_lea.vmem [#allocation2], %s1776_s25 }
  0x37   : > { %1957 = dma.done.wait (%p2732_p6), %s232_s26, 2048  }
  0x38   : > { %1959 = vsyncadd (%p2732_p6), %s232_s26, 4294965248  ;;  %p270_p10 = scmp.lt.s32.totalorder %s2053_s22, 3  ;;  %v1983_v0 = vmov 1   ;;  %v2722_v1 = vmov 0   ;;  %v1985_v3 = vmov 3   ;;  %v1986_v4 = vmov 2  }
  0x39   : > { %1862 = vset.pattern.permute.xlu1 %v1983_v0  ;;  %1860 = vset.pattern.permute.xlu0 %v2722_v1  ;;  %v1987_v5 = vmov 4   ;;  %v1988_v6 = vmov 6   ;;  %v1989_v7 = vmov 5   ;;  %v1990_v8 = vmov 7   ;;  %v280_v13 = vld [vmem:[%s2712_s1] sm:$0x3] }
  0x3a   : > { %s2141_s12 = scalar_select %p270_p10, %s2053_s22, 3  ;;  %v1991_v9 = vmov 10   ;;  %v1992_v10 = vmov 8   ;;  %v2719_v11 = vlaneseq  ;;  %v281_v19 = vld [vmem:[%s2713_s2] sm:$0x3]  ;;  %v2720_v30 = vmov 0.0  }
  0x3b   : > { %v1993_v25 = vmov 1966171168   ;;  %v2215_v44 = vld [vmem:[%s2132_s28 + $0x40] sm:$0xff]  ;;  %v2218_v45 = vld [vmem:[%s2132_s28 + $0x48] sm:$0xff]  ;;  %v2231_v52 = vld [vmem:[%s2132_s28 + $0x10] sm:$0xff]  ;;  %s1777_s11 = sshll.u32 %s2128_s23, 3 }
  0x3c   : > { %s1778_s14 = sshll.u32 %s2141_s12, 3  ;;  %v2160_v12 = vshrl.u32 %v2719_v11, 7  ;;  %v349_v26 = vunpack.c.l.s4 %v1993_v25  ;;  %v2226_v49 = vld [vmem:[%s2132_s28] sm:$0xff]  ;;  %v2234_v53 = vld [vmem:[%s2132_s28 + $0x8] sm:$0xff]  ;;  %v2241_v60 = vld [vmem:[%s2132_s28 + $0x18] sm:$0xff]  ;;  %s1789_s26 = sshll.u32 %s2053_s22, 7 }
  0x3d   : > { %s273_s8 = scalar_lea.vmem %s2711_s0, %s1778_s14  ;;  %s278_s25 = scalar_lea.vmem %s2715_s4, %s1778_s14 }
  0x3e   : > { %v2149_v2 = vld [vmem:[%s273_s8] sm:$0xff]  ;;  %v2166_v14 = vsub.s32 0, %v2160_v12  ;;  %v2169_v15 = vsub.s32 1, %v2160_v12  ;;  %v350_v28 = vunpack.c.0.s8 %v349_v26  ;;  %s1672_s16 = scalar_lea.hbm %s2716_s5, %s1789_s26  ;;  %s1661_s8 = scalar_lea.sflag [#allocation4], %s2128_s23 }
  0x3f   : > { %327 = vperm.xlu1 %1862, %v2149_v2   ;;  %307 = vperm.xlu0 %1860, %v2149_v2   ;;  %p2744_p12 = scmp.ne.s32.totalorder %s2729_s30, 0  ;;  %s2001_s22 = smov [#allocation5]  }
  0x40   : > { %v2172_v17 = vrot.slane %v280_v13, %v2166_v14  ;;  %v2178_v20 = vrot.slane %v280_v13, %v2169_v15  ;;  %v2181_v21 = vrot.slane %v281_v19, %v2166_v14  ;;  %v2185_v22 = vrot.slane %v281_v19, %v2169_v15  ;;  %v2254_v13 = vld [vmem:[%s2132_s28 + $0x20] sm:$0xff]  ;;  %s1918_s7 = sshll.u32 %s2001_s22, 4  ;;  %s1919_s7 = int_to_ptr.vmem [resolvable:$false] %s1918_s7 }
  0x41   : > { %v2196_v32 = vsub.s32 %v350_v28, %v2160_v12  ;;  %s1920_s9 = scalar_lea.vmem %s1919_s7, 256 }
  0x43   : > { %1863 = vset.pattern.permute.xlu1 %v1985_v3  ;;  %1861 = vset.pattern.permute.xlu0 %v1986_v4 }
  0x44   : > { %334 = vperm.xlu1 %1863, %v2149_v2   ;;  %312 = vperm.xlu0 %1861, %v2149_v2  }
  0x48   : > { %1864 = vset.pattern.permute.xlu1 %v1987_v5  ;;  %1865 = vset.pattern.permute.xlu0 %v1988_v6 }
  0x49   : > { %574 = vperm.xlu1 %1864, %v2149_v2   ;;  %579 = vperm.xlu0 %1865, %v2149_v2  }
  0x4d   : > { %1866 = vset.pattern.permute.xlu1 %v1989_v7  ;;  %1868 = vset.pattern.permute.xlu0 %v1992_v10 }
  0x4e   : > { %586 = vperm.xlu1 %1866, %v2149_v2  }
  0x52   : > { %1867 = vset.pattern.permute.xlu1 %v1990_v8 }
  0x53   : > { %593 = vperm.xlu1 %1867, %v2149_v2  }
  0x57   : > { %1869 = vset.pattern.permute.xlu1 %v1991_v9 }
  0xba   : > { %v328_v16 = vpop.permute.xlu1 %327  ;;  %v308_v18 = vpop.permute.xlu0 %307 }
  0xbb   : > { %vm309_vm0 = vcmp.ge.s32.totalorder %v2172_v17, %v308_v18  ;;  %vm310_vm1 = vcmp.ge.s32.totalorder %v2178_v20, %v308_v18  ;;  %vm329_vm5 = vcmp.ge.s32.totalorder %v2181_v21, %v328_v16  ;;  %vm330_vm7 = vcmp.ge.s32.totalorder %v2185_v22, %v328_v16  ;;  %v2257_v16 = vld [vmem:[%s2132_s28 + $0x28] sm:$0xff] }
  0xbf   : > { %v335_v23 = vpop.permute.xlu1 %334  ;;  %v313_v24 = vpop.permute.xlu0 %312 }
  0xc0   : > { %vm314_vm2 = vcmp.lt.s32.totalorder %v2172_v17, %v313_v24  ;;  %vm315_vm3 = vcmp.lt.s32.totalorder %v2178_v20, %v313_v24  ;;  %vm336_vm9 = vcmp.lt.s32.totalorder %v2181_v21, %v335_v23  ;;  %vm337_vm12 = vcmp.lt.s32.totalorder %v2185_v22, %v335_v23  ;;  %v2264_v24 = vld [vmem:[%s2132_s28 + $0x60] sm:$0xff] }
  0xc1   : > { %vm316_vm4 = vmand %vm309_vm0, %vm314_vm2 }
  0xc2   : > { %vm317_vm6 = vmand %vm310_vm1, %vm315_vm3 }
  0xc3   : > { %vm331_vm8 = vmand %vm316_vm4, %vm329_vm5 }
  0xc4   : > { %vm332_vm10 = vmand %vm317_vm6, %vm330_vm7  ;;  %v575_v27 = vpop.permute.xlu1 %574  ;;  %v580_v29 = vpop.permute.xlu0 %579 }
  0xc5   : > { %vm338_vm11 = vmand %vm331_vm8, %vm336_vm9  ;;  %vm576_vm14 = vcmp.ge.s32.totalorder %v2172_v17, %v575_v27  ;;  %vm577_vm15 = vcmp.ge.s32.totalorder %v2178_v20, %v575_v27  ;;  %vm581_vm0 = vcmp.lt.s32.totalorder %v2172_v17, %v580_v29  ;;  %vm582_vm1 = vcmp.lt.s32.totalorder %v2178_v20, %v580_v29 }
  0xc6   : > { %v1780_v31 = vsel %vm338_vm11, 1.0, %v2720_v30  ;;  %vm339_vm13 = vmand %vm332_vm10, %vm337_vm12 }
  0xc7   : > { %v1781_v33 = vsel %vm339_vm13, 1.0, %v2720_v30  ;;  %vm583_vm3 = vmand %vm576_vm14, %vm581_vm0 }
  0xc8   : > { %v516_v35 = vadd.f32 %v1781_v33, %v1780_v31  ;;  %v346_v36 = vcombine.low %v1780_v31, %v1781_v33  ;;  %v347_v37 = vcombine.high %v1780_v31, %v1781_v33  ;;  %vm584_vm5 = vmand %vm577_vm15, %vm582_vm1  ;;  %v2269_v31 = vld [vmem:[%s2132_s28 + $0x68] sm:$0xff] }
  0xc9   : > { %v587_v34 = vpop.permute.xlu1 %586 }
  0xca   : > { %vm588_vm2 = vcmp.ge.s32.totalorder %v2181_v21, %v587_v34  ;;  %517 = vadd.xlane.f32.xlu0 %v516_v35  ;;  %v354_v38 = vrot.slane %v346_v36, %v2196_v32  ;;  %v2206_v39 = vrot.slane %v347_v37, %v2196_v32  ;;  %vm589_vm4 = vcmp.ge.s32.totalorder %v2185_v22, %v587_v34 }
  0xcb   : > { %vm590_vm6 = vmand %vm583_vm3, %vm588_vm2 }
  0xcc   : > { %v362_v40 = vcombine.high %v354_v38, %v354_v38  ;;  %v377_v42 = vrot.slane %v2206_v39, %v2196_v32  ;;  %v370_v43 = vrot.slane %v354_v38, %v2196_v32  ;;  %vm591_vm7 = vmand %vm584_vm5, %vm589_vm4  ;;  %v363_v19 = vcombine.high %v2206_v39, %v2206_v39 }
  0xce   : > { %v594_v41 = vpop.permute.xlu1 %593  ;;  %v431_v46 = vrot.slane %v377_v42, %v2166_v14  ;;  %v435_v47 = vrot.slane %v377_v42, %v2169_v15  ;;  %v2223_v48 = vrot.slane %v362_v40, %v2196_v32  ;;  %v399_v50 = vrot.slane %v370_v43, %v2166_v14 }
  0xcf   : > { %vm595_vm8 = vcmp.lt.s32.totalorder %v2181_v21, %v594_v41  ;;  %vm596_vm9 = vcmp.lt.s32.totalorder %v2185_v22, %v594_v41  ;;  %v403_v54 = vrot.slane %v370_v43, %v2169_v15  ;;  %v392_v55 = vcombine.high %v370_v43, %v370_v43 }
  0xd0   : > { %vm597_vm10 = vmand %vm590_vm6, %vm595_vm8  ;;  %v393_v56 = vcombine.high %v377_v42, %v377_v42  ;;  %v484_v57 = vmul.f32 %v431_v46, %v2215_v44  ;;  %v485_v58 = vmul.f32 %v435_v47, %v2218_v45  ;;  %v407_v61 = vrot.slane %v2223_v48, %v2166_v14 }
  0xd1   : > { %vm598_vm11 = vmand %vm591_vm7, %vm596_vm9  ;;  %v1782_v51 = vsel %vm597_vm10, 1.0, %v2720_v30  ;;  %v411_v3 = vrot.slane %v2223_v48, %v2169_v15  ;;  %v476_v6 = vmul.f32 %v399_v50, %v2226_v49  ;;  %v477_v7 = vmul.f32 %v403_v54, %v2234_v53 }
  0xd2   : > { %v1783_v59 = vsel %vm598_vm11, 1.0, %v2720_v30  ;;  %v504_v4 = vadd.f32 %v485_v58, %v484_v57  ;;  %v478_v5 = vmul.f32 %v407_v61, %v2231_v52  ;;  %v415_v18 = vrot.slane %v392_v55, %v2166_v14 }
  0xd3   : > { %v775_v62 = vadd.f32 %v1783_v59, %v1782_v51  ;;  %v605_v63 = vcombine.low %v1782_v51, %v1783_v59  ;;  %v606_v0 = vcombine.high %v1782_v51, %v1783_v59  ;;  %v479_v10 = vmul.f32 %v411_v3, %v2241_v60 }
  0xd4   : > { %505 = vadd.xlane.f32.xlu0 %v504_v4  ;;  %v419_v23 = vrot.slane %v392_v55, %v2169_v15  ;;  %v447_v25 = vrot.slane %v393_v56, %v2166_v14  ;;  %v451_v26 = vrot.slane %v393_v56, %v2169_v15  ;;  %v492_v29 = vadd.f32 %v477_v7, %v476_v6  ;;  %v2302_v6 = vld [vmem:[%s2132_s28 + $0x58] sm:$0xff] }
  0xd5   : > { %776 = vadd.xlane.f32.xlu1 %v775_v62  ;;  %v613_v8 = vrot.slane %v605_v63, %v2196_v32  ;;  %v620_v9 = vrot.slane %v606_v0, %v2196_v32  ;;  %v495_v33 = vadd.f32 %v479_v10, %v478_v5  ;;  %v480_v34 = vmul.f32 %v415_v18, %v2254_v13  ;;  %v2299_v5 = vld [vmem:[%s2132_s28 + $0x50] sm:$0xff] }
  0xd6   : > { %v481_v35 = vmul.f32 %v419_v23, %v2257_v16  ;;  %v488_v37 = vmul.f32 %v447_v25, %v2264_v24  ;;  %v489_v41 = vmul.f32 %v451_v26, %v2269_v31  ;;  %v391_v46 = vrot.slane %v363_v19, %v2196_v32 }
  0xd7   : > { %v621_v27 = vcombine.high %v613_v8, %v613_v8  ;;  %v622_v28 = vcombine.high %v620_v9, %v620_v9  ;;  %v629_v36 = vrot.slane %v613_v8, %v2196_v32  ;;  %v636_v39 = vrot.slane %v620_v9, %v2196_v32 }
  0xd8   : > { %496 = vadd.xlane.f32.xlu0 %v495_v33  ;;  %v498_v55 = vadd.f32 %v481_v35, %v480_v34  ;;  %v439_v3 = vrot.slane %v391_v46, %v2166_v14  ;;  %v443_v4 = vrot.slane %v391_v46, %v2169_v15  ;;  %v510_v8 = vadd.f32 %v489_v41, %v488_v37 }
  0xd9   : > { %493 = vadd.xlane.f32.xlu1 %v492_v29  ;;  %v2276_v38 = vrot.slane %v621_v27, %v2196_v32  ;;  %v650_v40 = vrot.slane %v622_v28, %v2196_v32  ;;  %v658_v42 = vrot.slane %v629_v36, %v2166_v14  ;;  %v662_v43 = vrot.slane %v629_v36, %v2169_v15  ;;  %v2311_v28 = vld [vmem:[%s2132_s28 + $0x70] sm:$0xff]  ;;  %v2314_v29 = vld [vmem:[%s2132_s28 + $0x78] sm:$0xff] }
  0xda   : > { %v690_v51 = vrot.slane %v636_v39, %v2166_v14  ;;  %v694_v54 = vrot.slane %v636_v39, %v2169_v15  ;;  %v651_v7 = vcombine.high %v629_v36, %v629_v36  ;;  %v486_v23 = vmul.f32 %v439_v3, %v2299_v5 }
  0xdb   : > { %v666_v47 = vrot.slane %v2276_v38, %v2166_v14  ;;  %v670_v50 = vrot.slane %v2276_v38, %v2169_v15  ;;  %v735_v56 = vmul.f32 %v658_v42, %v2226_v49  ;;  %v736_v57 = vmul.f32 %v662_v43, %v2234_v53 }
  0xdc   : > { %v654_v58 = vcombine.high %v650_v40, %v650_v40  ;;  %v743_v62 = vmul.f32 %v690_v51, %v2215_v44  ;;  %v744_v63 = vmul.f32 %v694_v54, %v2218_v45  ;;  %499 = vadd.xlane.f32.xlu0 %v498_v55  ;;  %v487_v25 = vmul.f32 %v443_v4, %v2302_v6 }
  0xdd   : > { %v737_v59 = vmul.f32 %v666_v47, %v2231_v52  ;;  %v738_v61 = vmul.f32 %v670_v50, %v2241_v60  ;;  %v751_v0 = vadd.f32 %v736_v57, %v735_v56  ;;  %v674_v26 = vrot.slane %v651_v7, %v2166_v14 }
  0xde   : > { %v714_v9 = vrot.slane %v654_v58, %v2166_v14  ;;  %v718_v10 = vrot.slane %v654_v58, %v2169_v15  ;;  %v763_v19 = vadd.f32 %v744_v63, %v743_v62  ;;  %v678_v27 = vrot.slane %v651_v7, %v2169_v15  ;;  %v2333_v62 = vld [vmem:[%s2132_s28 + $0x30] sm:$0xff]  ;;  %v2336_v63 = vld [vmem:[%s2132_s28 + $0x38] sm:$0xff]  ;;  %s269_s28 = scalar_lea.vmem [#allocation5], %s1777_s11 }
  0xdf   : > { %752 = vadd.xlane.f32.xlu1 %v751_v0  ;;  %v754_v18 = vadd.f32 %v738_v61, %v737_v59  ;;  %v698_v35 = vrot.slane %v650_v40, %v2166_v14  ;;  %v702_v36 = vrot.slane %v650_v40, %v2169_v15  ;;  %v507_v37 = vadd.f32 %v487_v25, %v486_v23  ;;  %s1674_s12 = sshll.u32 %s269_s28, 4  ;;  %s1675_s12 = int_to_ptr.vmem [resolvable:$true] %s1674_s12 }
  0xe0   : > { %511 = vadd.xlane.f32.xlu0 %v510_v8  ;;  %v749_v33 = vmul.f32 %v714_v9, %v2311_v28  ;;  %v750_v34 = vmul.f32 %v718_v10, %v2314_v29  ;;  %v739_v41 = vmul.f32 %v674_v26, %v2254_v13  ;;  %v740_v42 = vmul.f32 %v678_v27, %v2257_v16  ;;  %s1914_s29 = scalar_lea.vmem %s1675_s12, 128  ;;  %p1921_p7 = scmp.lt.s32.totalorder %s1675_s12, %s1919_s7 }
  0xe1   : > { %v652_v43 = vcombine.high %v636_v39, %v636_v39  ;;  %v745_v50 = vmul.f32 %v698_v35, %v2299_v5  ;;  %v394_v51 = vcombine.high %v2223_v48, %v2223_v48  ;;  %v746_v40 = vmul.f32 %v702_v36, %v2302_v6  ;;  %p1915_p11 = scmp.ne.s32.totalorder %s1675_s12, %s1914_s29  ;;  %p1922_p8 = scmp.lt.s32.totalorder %s1920_s9, %s1914_s29 }
  0xe2   : > { %v772_v47 = vadd.f32 %v750_v34, %v749_v33  ;;  %v757_v54 = vadd.f32 %v740_v42, %v739_v41  ;;  %v395_v48 = vcombine.high %v391_v46, %v391_v46  ;;  %v653_v3 = vcombine.high %v2276_v38, %v2276_v38 }
  0xe3   : > { %764 = vadd.xlane.f32.xlu1 %v763_v19  ;;  %v706_v55 = vrot.slane %v652_v43, %v2166_v14  ;;  %v710_v56 = vrot.slane %v652_v43, %v2169_v15  ;;  %v423_v39 = vrot.slane %v394_v51, %v2166_v14  ;;  %v427_v57 = vrot.slane %v394_v51, %v2169_v15  ;;  %p1916_p4 = pnand %p1915_p11, %p2744_p12  ;;  %p1923_p9 = por %p1922_p8, %p1921_p7 }
  0xe4   : > { %755 = vadd.xlane.f32.xlu0 %v754_v18  ;;  %v766_v58 = vadd.f32 %v746_v40, %v745_v50  ;;  %v455_v8 = vrot.slane %v395_v48, %v2166_v14  ;;  %v459_v9 = vrot.slane %v395_v48, %v2169_v15  ;;  %v682_v10 = vrot.slane %v653_v3, %v2166_v14 }
  0xe5   : > { %v747_v59 = vmul.f32 %v706_v55, %v2264_v24  ;;  %v748_v61 = vmul.f32 %v710_v56, %v2269_v31  ;;  %v482_v0 = vmul.f32 %v423_v39, %v2333_v62  ;;  %v483_v7 = vmul.f32 %v427_v57, %v2336_v63  ;;  %p1917_p5 = pneg %p1916_p4 }
  0xe6   : > { %v490_v46 = vmul.f32 %v455_v8, %v2311_v28  ;;  %v491_v19 = vmul.f32 %v459_v9, %v2314_v29  ;;  %v686_v23 = vrot.slane %v653_v3, %v2169_v15  ;;  %v741_v38 = vmul.f32 %v682_v10, %v2333_v62 }
  0xe7   : > { %508 = vadd.xlane.f32.xlu1 %v507_v37  ;;  %v769_v4 = vadd.f32 %v748_v61, %v747_v59  ;;  %v501_v18 = vadd.f32 %v483_v7, %v482_v0  ;;  %v1995_v33 = vmov 12   ;;  %v1996_v34 = vmov 14   ;;  %p1924_p13 = pnand %p1923_p9, %p1917_p5 }
  0xe8   : > { %773 = vadd.xlane.f32.xlu0 %v772_v47  ;;  %v513_v25 = vadd.f32 %v491_v19, %v490_v46  ;;  %v742_v26 = vmul.f32 %v686_v23, %v2336_v63  ;;  %v1997_v35 = vmov 13   ;;  %v1998_v36 = vmov 9  }
  0xe9   : > { %v1999_v37 = vmov 11   ;;  %v2000_v41 = vmov 15   ;;  %v2362_v59 = vsub.s32 2, %v2160_v12  ;;  %v2365_v61 = vsub.s32 6, %v2160_v12 }
  0xea   : > { %v760_v27 = vadd.f32 %v742_v26, %v741_v38 }
  0xeb   : > { %758 = vadd.xlane.f32.xlu1 %v757_v54  ;;  %2733 = vst [vmem:[#allocation8_spill] sm:$0xff] %v2365_v61 }
  0xef   : > { %767 = vadd.xlane.f32.xlu1 %v766_v58  ;;  %v2359_v58 = vsub.s32 4, %v2160_v12 }
  0xf3   : > { %770 = vadd.xlane.f32.xlu1 %v769_v4  ;;  %v2368_v4 = vsub.s32 5, %v2160_v12 }
  0xf7   : > { %502 = vadd.xlane.f32.xlu1 %v501_v18 }
  0xfb   : > { %514 = vadd.xlane.f32.xlu1 %v513_v25 }
  0xfe   : > { %833 = vperm.xlu0 %1868, %v2149_v2  }
  0xff   : > { %761 = vadd.xlane.f32.xlu1 %v760_v27 }
 0x102   : > { %1872 = vset.pattern.permute.xlu0 %v1995_v33 }
 0x103   : > { %1092 = vperm.xlu0 %1872, %v2149_v2  }
 0x107   : > { %1873 = vset.pattern.permute.xlu0 %v1996_v34 }
 0x108   : > { %1097 = vperm.xlu0 %1873, %v2149_v2  }
 0x10c   : > { %1874 = vset.pattern.permute.xlu0 %v1997_v35 }
 0x10d   : > { %1104 = vperm.xlu0 %1874, %v2149_v2  }
 0x110   : > { %838 = vperm.xlu1 %1869, %v2149_v2  }
 0x111   : > { %1877 = vset.pattern.permute.xlu0 %v2722_v1 }
 0x114   : > { %1870 = vset.pattern.permute.xlu1 %v1998_v36 }
 0x115   : > { %845 = vperm.xlu1 %1870, %v2149_v2  }
 0x119   : > { %1871 = vset.pattern.permute.xlu1 %v1999_v37 }
 0x11a   : > { %852 = vperm.xlu1 %1871, %v2149_v2  }
 0x11e   : > { %1875 = vset.pattern.permute.xlu1 %v2000_v41 }
 0x153   : > { %v518_v42 = vpop.xlane.xlu0 %517 }
 0x154   : > { %v519_v43 = vadd.f32 2.56e-07, %v518_v42 }
 0x156   : > { %1878 = vrcp.f32 %v519_v43 }
 0x15d   : > { %v506_v50 = vpop.xlane.xlu0 %505 }
 0x15e   : > { %v777_v47 = vpop.xlane.xlu1 %776 }
 0x15f   : > { %v778_v51 = vadd.f32 2.56e-07, %v777_v47 }
 0x161   : > { %1880 = vrcp.f32 %v778_v51  ;;  %v497_v54 = vpop.xlane.xlu0 %496 }
 0x162   : > { %v494_v55 = vpop.xlane.xlu1 %493 }
 0x163   : > { %v1879_v40 = vpop.eup %1878 }
 0x164   : > { %v521_v56 = vmul.f32 %v1879_v40, %v519_v43  ;;  %v2389_v43 = vsub.s32 7, %v2160_v12 }
 0x165   : > { %v500_v39 = vpop.xlane.xlu0 %499 }
 0x166   : > { %v522_v57 = vsub.f32 2.0, %v521_v56  ;;  %2734 = vst [vmem:[#allocation9_spill] sm:$0xff] %v2389_v43 }
 0x168   : > { %v753_v48 = vpop.xlane.xlu1 %752  ;;  %v523_v0 = vmul.f32 %v1879_v40, %v522_v57 }
 0x169   : > { %v512_v3 = vpop.xlane.xlu0 %511 }
 0x16a   : > { %v544_v7 = vrot.slane %v523_v0, %v2359_v58  ;;  %v532_v8 = vrot.slane %v523_v0, %v2169_v15  ;;  %v528_v9 = vrot.slane %v523_v0, %v2166_v14  ;;  %v536_v10 = vrot.slane %v523_v0, %v2362_v59 }
 0x16b   : > { %v552_v18 = vrot.slane %v523_v0, %v2365_v61  ;;  %v548_v35 = vrot.slane %v523_v0, %v2368_v4 }
 0x16c   : > { %v765_v46 = vpop.xlane.xlu1 %764  ;;  %v2375_v23 = vmul.f32 %v544_v7, %v506_v50  ;;  %v2377_v25 = vmul.f32 %v532_v8, %v497_v54  ;;  %v2379_v38 = vmul.f32 %v528_v9, %v494_v55  ;;  %v2381_v26 = vmul.f32 %v536_v10, %v500_v39 }
 0x16d   : > { %v2383_v33 = vmul.f32 %v552_v18, %v512_v3  ;;  %v756_v34 = vpop.xlane.xlu0 %755 }
 0x16e   : > { %v1881_v19 = vpop.eup %1880 }
 0x16f   : > { %v780_v27 = vmul.f32 %v1881_v19, %v778_v51 }
 0x170   : > { %v509_v37 = vpop.xlane.xlu1 %508 }
 0x171   : > { %v781_v36 = vsub.f32 2.0, %v780_v27  ;;  %v2386_v41 = vmul.f32 %v548_v35, %v509_v37  ;;  %v774_v55 = vpop.xlane.xlu0 %773  ;;  %v2411_v27 = vsub.s32 3, %v2160_v12  ;;  %v556_v37 = vrot.slane %v523_v0, %v2389_v43 }
 0x173   : > { %v782_v42 = vmul.f32 %v1881_v19, %v781_v36 }
 0x174   : > { %v759_v40 = vpop.xlane.xlu1 %758 }
 0x175   : > { %v787_v47 = vrot.slane %v782_v42, %v2166_v14  ;;  %v791_v50 = vrot.slane %v782_v42, %v2169_v15  ;;  %v803_v54 = vrot.slane %v782_v42, %v2359_v58  ;;  %v815_v51 = vrot.slane %v782_v42, %v2389_v43 }
 0x176   : > { %v795_v56 = vrot.slane %v782_v42, %v2362_v59  ;;  %v807_v9 = vrot.slane %v782_v42, %v2368_v4  ;;  %v811_v19 = vrot.slane %v782_v42, %v2365_v61 }
 0x177   : > { %v2396_v39 = vmul.f32 %v787_v47, %v753_v48  ;;  %v2398_v57 = vmul.f32 %v791_v50, %v756_v34  ;;  %v2400_v3 = vmul.f32 %v803_v54, %v765_v46  ;;  %v2402_v7 = vmul.f32 %v815_v51, %v774_v55 }
 0x178   : > { %v2404_v8 = vmul.f32 %v795_v56, %v759_v40  ;;  %v768_v10 = vpop.xlane.xlu1 %767  ;;  %v540_v46 = vrot.slane %v523_v0, %v2411_v27  ;;  %v799_v54 = vrot.slane %v782_v42, %v2411_v27 }
 0x179   : > { %2735 = vst [vmem:[#allocation10_spill] sm:$0xff] %v2402_v7  ;;  %v2407_v18 = vmul.f32 %v807_v9, %v768_v10  ;;  %v834_v56 = vpop.permute.xlu0 %833 }
 0x17a   : > { %vm835_vm13 = vcmp.ge.s32.totalorder %v2172_v17, %v834_v56  ;;  %vm836_vm15 = vcmp.ge.s32.totalorder %v2178_v20, %v834_v56 }
 0x17c   : > { %v771_v48 = vpop.xlane.xlu1 %770 }
 0x17d   : > { %v2413_v35 = vmul.f32 %v811_v19, %v771_v48 }
 0x17f   : > { %2736 = vst [vmem:[#allocation11_spill] sm:$0xff] %v2413_v35 }
 0x180   : > { %v503_v34 = vpop.xlane.xlu1 %502 }
 0x181   : > { %v2416_v36 = vmul.f32 %v540_v46, %v503_v34 }
 0x184   : > { %v515_v47 = vpop.xlane.xlu1 %514 }
 0x185   : > { %v2419_v50 = vmul.f32 %v556_v37, %v515_v47 }
 0x188   : > { %v762_v51 = vpop.xlane.xlu1 %761 }
 0x189   : > { %v2422_v40 = vmul.f32 %v799_v54, %v762_v51 }
 0x18c   : > { %v839_v55 = vpop.permute.xlu1 %838 }
 0x18d   : > { %vm840_vm12 = vcmp.lt.s32.totalorder %v2172_v17, %v839_v55  ;;  %vm841_vm14 = vcmp.lt.s32.totalorder %v2178_v20, %v839_v55 }
 0x18e   : > { %vm842_vm1 = vmand %vm835_vm13, %vm840_vm12 }
 0x18f   : > { %vm843_vm3 = vmand %vm836_vm15, %vm841_vm14 }
 0x190   : > { %v846_v9 = vpop.permute.xlu1 %845 }
 0x191   : > { %vm847_vm0 = vcmp.ge.s32.totalorder %v2181_v21, %v846_v9  ;;  %vm848_vm2 = vcmp.ge.s32.totalorder %v2185_v22, %v846_v9 }
 0x192   : > { %vm849_vm4 = vmand %vm842_vm1, %vm847_vm0 }
 0x193   : > { %vm850_vm5 = vmand %vm843_vm3, %vm848_vm2 }
 0x195   : > { %v853_v0 = vpop.permute.xlu1 %852 }
 0x196   : > { %vm854_vm6 = vcmp.lt.s32.totalorder %v2181_v21, %v853_v0  ;;  %vm855_vm7 = vcmp.lt.s32.totalorder %v2185_v22, %v853_v0 }
 0x197   : > { %vm856_vm8 = vmand %vm849_vm4, %vm854_vm6 }
 0x198   : > { %vm857_vm9 = vmand %vm850_vm5, %vm855_vm7  ;;  %v1784_v42 = vsel %vm856_vm8, 1.0, %v2720_v30  ;;  %vm1416_vm8 = vcmask 1041409  }
 0x199   : > { %v1785_v10 = vsel %vm857_vm9, 1.0, %v2720_v30  ;;  %vm1418_vm9 = vcmask 1042434  }
 0x19a   : > { %v864_v19 = vcombine.low %v1784_v42, %v1785_v10  ;;  %v865_v48 = vcombine.high %v1784_v42, %v1785_v10 }
 0x19c   : > { %v872_v46 = vrot.slane %v864_v19, %v2196_v32  ;;  %v879_v34 = vrot.slane %v865_v48, %v2196_v32 }
 0x19e   : > { %v880_v37 = vcombine.high %v872_v46, %v872_v46  ;;  %v888_v47 = vrot.slane %v872_v46, %v2196_v32  ;;  %v895_v56 = vrot.slane %v879_v34, %v2196_v32 }
 0x1a0   : > { %v917_v54 = vrot.slane %v888_v47, %v2166_v14  ;;  %v921_v51 = vrot.slane %v888_v47, %v2169_v15  ;;  %v902_v55 = vrot.slane %v880_v37, %v2196_v32 }
 0x1a2   : > { %v994_v9 = vmul.f32 %v917_v54, %v2226_v49  ;;  %v995_v0 = vmul.f32 %v921_v51, %v2234_v53  ;;  %v925_v11 = vrot.slane %v902_v55, %v2166_v14  ;;  %v929_v19 = vrot.slane %v902_v55, %v2169_v15 }
 0x1a3   : > { %v912_v48 = vcombine.high %v902_v55, %v902_v55  ;;  %v949_v54 = vrot.slane %v895_v56, %v2166_v14  ;;  %v953_v51 = vrot.slane %v895_v56, %v2169_v15 }
 0x1a4   : > { %v1010_v30 = vadd.f32 %v995_v0, %v994_v9  ;;  %v996_v46 = vmul.f32 %v925_v11, %v2231_v52  ;;  %v997_v1 = vmul.f32 %v929_v19, %v2241_v60  ;;  %v1034_v19 = vadd.f32 %v1785_v10, %v1784_v42 }
 0x1a5   : > { %v941_v7 = vrot.slane %v912_v48, %v2166_v14  ;;  %v945_v37 = vrot.slane %v912_v48, %v2169_v15  ;;  %v1002_v11 = vmul.f32 %v949_v54, %v2215_v44  ;;  %v1003_v9 = vmul.f32 %v953_v51, %v2218_v45  ;;  %v1093_v54 = vpop.permute.xlu0 %1092 }
 0x1a6   : > { %1011 = vadd.xlane.f32.xlu1 %v1010_v30  ;;  %v1013_v43 = vadd.f32 %v997_v1, %v996_v46  ;;  %v2737_v1 = vmov 0   ;;  %v910_v30 = vcombine.high %v888_v47, %v888_v47  ;;  %vm1094_vm10 = vcmp.ge.s32.totalorder %v2172_v17, %v1093_v54 }
 0x1a7   : > { %v1000_v61 = vmul.f32 %v941_v7, %v2333_v62  ;;  %v1001_v35 = vmul.f32 %v945_v37, %v2336_v63  ;;  %v1022_v0 = vadd.f32 %v1003_v9, %v1002_v11  ;;  %vm1095_vm12 = vcmp.ge.s32.totalorder %v2178_v20, %v1093_v54 }
 0x1a8   : > { %1014 = vadd.xlane.f32.xlu0 %v1013_v43  ;;  %v933_v7 = vrot.slane %v910_v30, %v2166_v14  ;;  %v937_v48 = vrot.slane %v910_v30, %v2169_v15  ;;  %v911_v43 = vcombine.high %v895_v56, %v895_v56  ;;  %v2738_v30 = vmov 0.0  }
 0x1a9   : > { %v1019_v55 = vadd.f32 %v1001_v35, %v1000_v61  ;;  %v1098_v51 = vpop.permute.xlu0 %1097 }
 0x1aa   : > { %v998_v61 = vmul.f32 %v933_v7, %v2254_v13  ;;  %v999_v35 = vmul.f32 %v937_v48, %v2257_v16  ;;  %v965_v46 = vrot.slane %v911_v43, %v2166_v14  ;;  %v969_v37 = vrot.slane %v911_v43, %v2169_v15 }
 0x1ab   : > { %vm1099_vm11 = vcmp.lt.s32.totalorder %v2172_v17, %v1098_v51  ;;  %vm1100_vm13 = vcmp.lt.s32.totalorder %v2178_v20, %v1098_v51 }
 0x1ac   : > { %1020 = vadd.xlane.f32.xlu0 %v1019_v55  ;;  %v1016_v42 = vadd.f32 %v999_v35, %v998_v61  ;;  %v1006_v10 = vmul.f32 %v965_v46, %v2264_v24  ;;  %v881_v55 = vcombine.high %v879_v34, %v879_v34  ;;  %vm1101_vm14 = vmand %vm1094_vm10, %vm1099_vm11  ;;  %vm1420_vm10 = vcmask 1043459  }
 0x1ad   : > { %v1105_v56 = vpop.permute.xlu0 %1104  ;;  %vm1102_vm0 = vmand %vm1095_vm12, %vm1100_vm13  ;;  %vm1422_vm11 = vcmask 1044484   ;;  %vm1424_vm12 = vcmask 1045509   ;;  %vm1426_vm13 = vcmask 1046534  }
 0x1ae   : > { %v909_v11 = vrot.slane %v881_v55, %v2196_v32  ;;  %vm1106_vm15 = vcmp.ge.s32.totalorder %v2181_v21, %v1105_v56  ;;  %vm1107_vm1 = vcmp.ge.s32.totalorder %v2185_v22, %v1105_v56 }
 0x1af   : > { %vm1108_vm2 = vmand %vm1101_vm14, %vm1106_vm15  ;;  %vm1428_vm14 = vcmask 1047559   ;;  %vm1650_vm15 = vcmask 64512  }
 0x1b0   : > { %1023 = vadd.xlane.f32.xlu0 %v1022_v0  ;;  %v957_v0 = vrot.slane %v909_v11, %v2166_v14  ;;  %vm1109_vm3 = vmand %vm1102_vm0, %vm1107_vm1  ;;  %vm1652_vm0 = vcmask 130048   ;;  %vm1654_vm1 = vcmask 195584  }
 0x1b2   : > { %v1004_v48 = vmul.f32 %v957_v0, %v2299_v5 }
 0x1b4   : > { %1035 = vadd.xlane.f32.xlu0 %v1034_v19  ;;  %v961_v19 = vrot.slane %v909_v11, %v2169_v15 }
 0x1b6   : > { %v1005_v61 = vmul.f32 %v961_v19, %v2302_v6 }
 0x1b7   : > { %1111 = vperm.xlu1 %1875, %v2149_v2   ;;  %v1007_v2 = vmul.f32 %v969_v37, %v2269_v31 }
 0x1b9   : > { %v1028_v47 = vadd.f32 %v1007_v2, %v1006_v10 }
 0x1bb   : > { %1876 = vset.pattern.permute.xlu1 %v2737_v1  ;;  %v913_v1 = vcombine.high %v909_v11, %v909_v11 }
 0x1bd   : > { %v973_v35 = vrot.slane %v913_v1, %v2166_v14  ;;  %v977_v46 = vrot.slane %v913_v1, %v2169_v15 }
 0x1bf   : > { %v1008_v54 = vmul.f32 %v973_v35, %v2311_v28  ;;  %v1009_v51 = vmul.f32 %v977_v46, %v2314_v29 }
 0x1db   : > { %1017 = vadd.xlane.f32.xlu1 %v1016_v42 }
 0x1df   : > { %1029 = vadd.xlane.f32.xlu1 %v1028_v47  ;;  %v1025_v47 = vadd.f32 %v1005_v61, %v1004_v48  ;;  %v1031_v48 = vadd.f32 %v1009_v51, %v1008_v54 }
 0x22f   : > { %v2470_v9 = vpop.xlane.xlu1 %1011 }
 0x231   : > { %v2474_v34 = vpop.xlane.xlu0 %1014 }
 0x233   : > { %v1112_v17 = vpop.permute.xlu1 %1111 }
 0x234   : > { %vm1113_vm4 = vcmp.lt.s32.totalorder %v2181_v21, %v1112_v17  ;;  %vm1114_vm5 = vcmp.lt.s32.totalorder %v2185_v22, %v1112_v17 }
 0x235   : > { %vm1115_vm6 = vmand %vm1108_vm2, %vm1113_vm4  ;;  %v2480_v20 = vpop.xlane.xlu0 %1020  ;;  %vm1658_vm2 = vcmask 261120  }
 0x236   : > { %vm1116_vm7 = vmand %vm1109_vm3, %vm1114_vm5  ;;  %v1786_v7 = vsel %vm1115_vm6, 1.0, %v2738_v30 }
 0x237   : > { %v1787_v43 = vsel %vm1116_vm7, 1.0, %v2738_v30 }
 0x238   : > { %v1293_v37 = vadd.f32 %v1787_v43, %v1786_v7  ;;  %v1123_v21 = vcombine.low %v1786_v7, %v1787_v43  ;;  %v1124_v42 = vcombine.high %v1786_v7, %v1787_v43 }
 0x239   : > { %v2488_v22 = vpop.xlane.xlu0 %1023 }
 0x23a   : > { %1294 = vadd.xlane.f32.xlu0 %v1293_v37  ;;  %v1131_v10 = vrot.slane %v1123_v21, %v2196_v32  ;;  %v1138_v2 = vrot.slane %v1124_v42, %v2196_v32 }
 0x23c   : > { %v1139_v55 = vcombine.high %v1131_v10, %v1131_v10  ;;  %v1140_v56 = vcombine.high %v1138_v2, %v1138_v2  ;;  %v1147_v11 = vrot.slane %v1131_v10, %v2196_v32  ;;  %v1154_v0 = vrot.slane %v1138_v2, %v2196_v32 }
 0x23d   : > { %v1036_v17 = vpop.xlane.xlu0 %1035 }
 0x23e   : > { %1026 = vadd.xlane.f32.xlu0 %v1025_v47  ;;  %v1037_v19 = vadd.f32 2.56e-07, %v1036_v17  ;;  %v1176_v1 = vrot.slane %v1147_v11, %v2166_v14  ;;  %v1180_v30 = vrot.slane %v1147_v11, %v2169_v15  ;;  %v1161_v7 = vrot.slane %v1139_v55, %v2196_v32 }
 0x23f   : > { %v1169_v43 = vcombine.high %v1147_v11, %v1147_v11  ;;  %v1208_v61 = vrot.slane %v1154_v0, %v2166_v14  ;;  %v1168_v35 = vrot.slane %v1140_v56, %v2196_v32  ;;  %v1212_v32 = vrot.slane %v1154_v0, %v2169_v15 }
 0x240   : > { %1882 = vrcp.f32 %v1037_v19  ;;  %v1253_v46 = vmul.f32 %v1176_v1, %v2226_v49  ;;  %v1254_v37 = vmul.f32 %v1180_v30, %v2234_v53  ;;  %v1184_v21 = vrot.slane %v1161_v7, %v2166_v14 }
 0x241   : > { %v1188_v42 = vrot.slane %v1161_v7, %v2169_v15  ;;  %v1192_v10 = vrot.slane %v1169_v43, %v2166_v14  ;;  %v1196_v2 = vrot.slane %v1169_v43, %v2169_v15  ;;  %v1171_v47 = vcombine.high %v1161_v7, %v1161_v7 }
 0x242   : > { %1032 = vadd.xlane.f32.xlu0 %v1031_v48  ;;  %v1269_v54 = vadd.f32 %v1254_v37, %v1253_v46  ;;  %v1255_v51 = vmul.f32 %v1184_v21, %v2231_v52  ;;  %v1261_v17 = vmul.f32 %v1208_v61, %v2215_v44  ;;  %v1216_v1 = vrot.slane %v1168_v35, %v2166_v14 }
 0x243   : > { %v1256_v55 = vmul.f32 %v1188_v42, %v2241_v60  ;;  %v1257_v49 = vmul.f32 %v1192_v10, %v2254_v13  ;;  %v1258_v53 = vmul.f32 %v1196_v2, %v2257_v16  ;;  %v1200_v56 = vrot.slane %v1171_v47, %v2166_v14 }
 0x244   : > { %1270 = vadd.xlane.f32.xlu1 %v1269_v54  ;;  %v1204_v11 = vrot.slane %v1171_v47, %v2169_v15  ;;  %v1220_v7 = vrot.slane %v1168_v35, %v2169_v15  ;;  %v1170_v48 = vcombine.high %v1154_v0, %v1154_v0  ;;  %v1262_v16 = vmul.f32 %v1212_v32, %v2218_v45 }
 0x245   : > { %v1272_v30 = vadd.f32 %v1256_v55, %v1255_v51  ;;  %v1259_v52 = vmul.f32 %v1200_v56, %v2333_v62  ;;  %v1275_v60 = vadd.f32 %v1258_v53, %v1257_v49  ;;  %v1172_v43 = vcombine.high %v1168_v35, %v1168_v35 }
 0x246   : > { %v1260_v13 = vmul.f32 %v1204_v11, %v2336_v63  ;;  %v1224_v46 = vrot.slane %v1170_v48, %v2166_v14  ;;  %v1228_v37 = vrot.slane %v1170_v48, %v2169_v15  ;;  %v1263_v44 = vmul.f32 %v1216_v1, %v2299_v5 }
 0x247   : > { %1273 = vadd.xlane.f32.xlu0 %v1272_v30  ;;  %v1264_v62 = vmul.f32 %v1220_v7, %v2302_v6  ;;  %v1232_v21 = vrot.slane %v1172_v43, %v2166_v14  ;;  %v1236_v0 = vrot.slane %v1172_v43, %v2169_v15  ;;  %v1281_v42 = vadd.f32 %v1262_v16, %v1261_v17 }
 0x248   : > { %1276 = vadd.xlane.f32.xlu1 %v1275_v60  ;;  %v1278_v61 = vadd.f32 %v1260_v13, %v1259_v52  ;;  %v1265_v63 = vmul.f32 %v1224_v46, %v2264_v24  ;;  %v1266_v45 = vmul.f32 %v1228_v37, %v2269_v31  ;;  %v2739_v48 = vlaneseq }
 0x249   : > { %v1284_v10 = vadd.f32 %v1264_v62, %v1263_v44  ;;  %v1267_v2 = vmul.f32 %v1232_v21, %v2311_v28  ;;  %v1268_v5 = vmul.f32 %v1236_v0, %v2314_v29 }
 0x24a   : > { %v1287_v54 = vadd.f32 %v1266_v45, %v1265_v63  ;;  %v2565_v60 = vand.u32 127, %v2739_v48  ;;  %v2740_v63 = vld [vmem:[#allocation11_spill] sm:$0xff] }
 0x24b   : > { %1279 = vadd.xlane.f32.xlu0 %v1278_v61  ;;  %v1290_v51 = vadd.f32 %v1268_v5, %v1267_v2 }
 0x24c   : > { %1282 = vadd.xlane.f32.xlu1 %v1281_v42  ;;  %v2569_v46 = vsub.s32 %v2565_v60, %v2160_v12 }
 0x24d   : > { %v1883_v35 = vpop.eup %1882 }
 0x24e   : > { %v1039_v47 = vmul.f32 %v1883_v35, %v1037_v19 }
 0x24f   : > { %1285 = vadd.xlane.f32.xlu0 %v1284_v10  ;;  %v2741_v10 = vld [vmem:[#allocation8_spill] sm:$0xff] }
 0x250   : > { %v1040_v6 = vsub.f32 2.0, %v1039_v47  ;;  %1288 = vadd.xlane.f32.xlu1 %v1287_v54  ;;  %v2742_v47 = vld [vmem:[#allocation9_spill] sm:$0xff]  ;;  %v2743_v54 = vld [vmem:[#allocation10_spill] sm:$0xff] }
 0x252   : > { %v2530_v32 = vmul.f32 %v1883_v35, %v1040_v6 }
 0x253   : > { %1291 = vadd.xlane.f32.xlu0 %v1290_v51 }
 0x254   : > { %v1058_v24 = vrot.slane %v2530_v32, %v2411_v27  ;;  %v1062_v31 = vrot.slane %v2530_v32, %v2359_v58  ;;  %v1050_v29 = vrot.slane %v2530_v32, %v2169_v15  ;;  %v1066_v42 = vrot.slane %v2530_v32, %v2368_v4 }
 0x256   : > { %v1086_v55 = vmul.f32 %v1058_v24, %v2480_v20  ;;  %v2538_v28 = vmul.f32 %v1062_v31, %v2488_v22  ;;  %v1084_v20 = vmul.f32 %v1050_v29, %v2474_v34 }
 0x261   : > { %1359 = vperm.xlu1 %1876, %v2379_v38  }
 0x264   : > { %v1018_v38 = vpop.xlane.xlu1 %1017 }
 0x265   : > { %1365 = vperm.xlu1 %1876, %v2381_v26   ;;  %v1054_v26 = vrot.slane %v2530_v32, %v2362_v59 }
 0x269   : > { %1362 = vperm.xlu0 %1877, %v2377_v25   ;;  %1368 = vperm.xlu1 %1876, %v2416_v36  }
 0x26d   : > { %1446 = vperm.xlu0 %1877, %v2404_v8   ;;  %1371 = vperm.xlu1 %1876, %v2375_v23   ;;  %v1046_v23 = vrot.slane %v2530_v32, %v2166_v14  ;;  %v1030_v8 = vpop.xlane.xlu1 %1029 }
 0x26f   : > { %v1083_v25 = vmul.f32 %v1046_v23, %v2470_v9 }
 0x271   : > { %1452 = vperm.xlu0 %1877, %v2400_v3   ;;  %1374 = vperm.xlu1 %1876, %v2386_v41   ;;  %v1085_v41 = vmul.f32 %v1054_v26, %v1018_v38 }
 0x275   : > { %1516 = vperm.xlu0 %1877, %v1084_v20   ;;  %1377 = vperm.xlu1 %1876, %v2383_v33  }
 0x279   : > { %1380 = vperm.xlu1 %1876, %v2419_v50  }
 0x27d   : > { %1440 = vperm.xlu1 %1876, %v2396_v39  }
 0x281   : > { %1443 = vperm.xlu1 %1876, %v2398_v57  }
 0x285   : > { %1449 = vperm.xlu1 %1876, %v2422_v40  }
 0x289   : > { %1513 = vperm.xlu1 %1876, %v1083_v25  }
 0x28d   : > { %1519 = vperm.xlu1 %1876, %v1085_v41  }
 0x2c3   : > { %v1295_v33 = vpop.xlane.xlu0 %1294 }
 0x2c4   : > { %v1296_v3 = vadd.f32 2.56e-07, %v1295_v33 }
 0x2c6   : > { %1884 = vrcp.f32 %v1296_v3 }
 0x2c7   : > { %v1027_v39 = vpop.xlane.xlu0 %1026 }
 0x2c8   : > { %v1088_v45 = vmul.f32 %v1066_v42, %v1027_v39 }
 0x2cb   : > { %v1033_v57 = vpop.xlane.xlu0 %1032 }
 0x2cd   : > { %v1271_v36 = vpop.xlane.xlu1 %1270 }
 0x2d0   : > { %v1274_v50 = vpop.xlane.xlu0 %1273 }
 0x2d1   : > { %v1277_v34 = vpop.xlane.xlu1 %1276 }
 0x2d3   : > { %v1885_v22 = vpop.eup %1884 }
 0x2d4   : > { %v1298_v40 = vmul.f32 %v1885_v22, %v1296_v3  ;;  %v1280_v19 = vpop.xlane.xlu0 %1279 }
 0x2d5   : > { %v1283_v9 = vpop.xlane.xlu1 %1282 }
 0x2d6   : > { %v1299_v49 = vsub.f32 2.0, %v1298_v40 }
 0x2d8   : > { %v1300_v53 = vmul.f32 %v1885_v22, %v1299_v49  ;;  %v1286_v1 = vpop.xlane.xlu0 %1285  ;;  %v1463_v22 = vadd.s32 4294967288, %v2565_v60  ;;  %v1536_v49 = vadd.s32 4294967280, %v2565_v60 }
 0x2d9   : > { %v1289_v56 = vpop.xlane.xlu1 %1288 }
 0x2da   : > { %v1305_v11 = vrot.slane %v1300_v53, %v2166_v14  ;;  %v1309_v17 = vrot.slane %v1300_v53, %v2169_v15  ;;  %v1313_v7 = vrot.slane %v1300_v53, %v2362_v59  ;;  %v1317_v15 = vrot.slane %v1300_v53, %v2411_v27 }
 0x2db   : > { %v1321_v0 = vrot.slane %v1300_v53, %v2359_v58  ;;  %v1325_v5 = vrot.slane %v1300_v53, %v2368_v4  ;;  %v1074_v58 = vrot.slane %v2530_v32, %v2742_v47  ;;  %v1329_v24 = vrot.slane %v1300_v53, %v2741_v10 }
 0x2dc   : > { %v1342_v30 = vmul.f32 %v1305_v11, %v1271_v36  ;;  %v1343_v52 = vmul.f32 %v1309_v17, %v1274_v50  ;;  %v1344_v16 = vmul.f32 %v1313_v7, %v1277_v34  ;;  %v1292_v43 = vpop.xlane.xlu0 %1291  ;;  %v1345_v21 = vmul.f32 %v1317_v15, %v1280_v19 }
 0x2dd   : > { %v1360_v13 = vpop.permute.xlu1 %1359  ;;  %v1346_v35 = vmul.f32 %v1321_v0, %v1283_v9  ;;  %v1090_v6 = vmul.f32 %v1074_v58, %v1033_v57  ;;  %v1347_v51 = vmul.f32 %v1325_v5, %v1286_v1  ;;  %v1333_v31 = vrot.slane %v1300_v53, %v2742_v47 }
 0x2de   : > { %1586 = vperm.xlu0 %1877, %v1342_v30   ;;  %1589 = vperm.xlu1 %1876, %v1343_v52   ;;  %v1387_v59 = vrot.slane %v1360_v13, %v2569_v46  ;;  %v2605_v9 = vsub.s32 %v1463_v22, %v2160_v12  ;;  %v1609_v30 = vadd.s32 4294967272, %v2565_v60  ;;  %v1539_v48 = vsub.s32 %v1536_v49, %v2160_v12 }
 0x2e1   : > { %v1366_v14 = vpop.permute.xlu1 %1365 }
 0x2e2   : > { %1522 = vperm.xlu0 %1877, %v1086_v55   ;;  %1592 = vperm.xlu1 %1876, %v1344_v16   ;;  %v1395_v61 = vrot.slane %v1366_v14, %v2569_v46  ;;  %v1348_v55 = vmul.f32 %v1329_v24, %v1289_v56 }
 0x2e4   : > { %v1363_v37 = vpop.permute.xlu0 %1362 }
 0x2e5   : > { %v1391_v44 = vrot.slane %v1363_v37, %v2569_v46  ;;  %v1369_v29 = vpop.permute.xlu1 %1368 }
 0x2e6   : > { %1455 = vperm.xlu0 %1877, %v2407_v18   ;;  %1525 = vperm.xlu1 %1876, %v2538_v28   ;;  %v1070_v18 = vrot.slane %v2530_v32, %v2741_v10  ;;  %v1349_v28 = vmul.f32 %v1333_v31, %v1292_v43  ;;  %v1399_v11 = vrot.slane %v1369_v29, %v2569_v46 }
 0x2e7   : > { %v1417_v62 = vsel %vm1416_vm8, %v1391_v44, %v1387_v59  ;;  %v2623_v59 = vsub.s32 %v1609_v30, %v2160_v12 }
 0x2e8   : > { %v1419_v27 = vsel %vm1418_vm9, %v1395_v61, %v1417_v62  ;;  %v1089_v2 = vmul.f32 %v1070_v18, %v1030_v8  ;;  %v1447_v26 = vpop.permute.xlu0 %1446 }
 0x2e9   : > { %v1372_v4 = vpop.permute.xlu1 %1371  ;;  %v1421_v43 = vsel %vm1420_vm10, %v1399_v11, %v1419_v27  ;;  %v1475_v37 = vrot.slane %v1447_v26, %v2605_v9 }
 0x2ea   : > { %1458 = vperm.xlu1 %1876, %v2740_v63   ;;  %1595 = vperm.xlu0 %1877, %v1345_v21   ;;  %v1403_v1 = vrot.slane %v1372_v4, %v2569_v46 }
 0x2ec   : > { %v2595_v33 = vpop.permute.xlu0 %1452  ;;  %v1423_v60 = vsel %vm1422_vm11, %v1403_v1, %v1421_v43 }
 0x2ed   : > { %v1375_v20 = vpop.permute.xlu1 %1374  ;;  %v1483_v44 = vrot.slane %v2595_v33, %v2605_v9 }
 0x2ee   : > { %1598 = vperm.xlu1 %1876, %v1346_v35   ;;  %1528 = vperm.xlu0 %1877, %v1088_v45   ;;  %v1407_v52 = vrot.slane %v1375_v20, %v2569_v46 }
 0x2f0   : > { %v1517_v39 = vpop.permute.xlu0 %1516  ;;  %v1425_v61 = vsel %vm1424_vm12, %v1407_v52, %v1423_v60 }
 0x2f1   : > { %v2591_v23 = vpop.permute.xlu1 %1377  ;;  %v1544_v21 = vrot.slane %v1517_v39, %v1539_v48 }
 0x2f2   : > { %1531 = vperm.xlu1 %1876, %v1089_v2   ;;  %1461 = vperm.xlu0 %1877, %v2743_v54   ;;  %v1411_v45 = vrot.slane %v2591_v23, %v2569_v46 }
 0x2f5   : > { %v2593_v32 = vpop.permute.xlu1 %1380 }
 0x2f6   : > { %1534 = vperm.xlu1 %1876, %v1090_v6   ;;  %1601 = vperm.xlu0 %1877, %v1347_v51   ;;  %v1415_v12 = vrot.slane %v2593_v32, %v2569_v46 }
 0x2f9   : > { %v1441_v25 = vpop.permute.xlu1 %1440 }
 0x2fa   : > { %1604 = vperm.xlu0 %1877, %v1348_v55   ;;  %1607 = vperm.xlu1 %1876, %v1349_v28   ;;  %v1467_v7 = vrot.slane %v1441_v25, %v2605_v9 }
 0x2fd   : > { %v1444_v38 = vpop.permute.xlu1 %1443 }
 0x2fe   : > { %v1471_v17 = vrot.slane %v1444_v38, %v2605_v9 }
 0x300   : > { %v1496_v14 = vsel %vm1416_vm8, %v1471_v17, %v1467_v7  ;;  %v1656_v17 = vld [vmem:[%s278_s25] sm:$0xff] }
 0x301   : > { %v1450_v41 = vpop.permute.xlu1 %1449  ;;  %v1497_v0 = vsel %vm1418_vm9, %v1475_v37, %v1496_v14 }
 0x302   : > { %v1479_v15 = vrot.slane %v1450_v41, %v2605_v9 }
 0x304   : > { %v1498_v35 = vsel %vm1420_vm10, %v1479_v15, %v1497_v0 }
 0x305   : > { %v1514_v3 = vpop.permute.xlu1 %1513  ;;  %v1499_v20 = vsel %vm1422_vm11, %v1483_v44, %v1498_v35 }
 0x306   : > { %v1540_v62 = vrot.slane %v1514_v3, %v1539_v48 }
 0x308   : > { %v1569_v58 = vsel %vm1416_vm8, %v1544_v21, %v1540_v62 }
 0x309   : > { %v1520_v8 = vpop.permute.xlu1 %1519 }
 0x30a   : > { %v1548_v27 = vrot.slane %v1520_v8, %v1539_v48  ;;  %v1427_v8 = vsel %vm1426_vm13, %v1411_v45, %v1425_v61 }
 0x30c   : > { %v1570_v51 = vsel %vm1418_vm9, %v1548_v27, %v1569_v58 }
 0x359   : > { %v2597_v57 = vpop.permute.xlu1 %1589  ;;  %v2599_v36 = vpop.permute.xlu0 %1586 }
 0x35a   : > { %v1617_v18 = vrot.slane %v2597_v57, %v2623_v59  ;;  %v1613_v2 = vrot.slane %v2599_v36, %v2623_v59 }
 0x35c   : > { %v1642_v25 = vsel %vm1416_vm8, %v1617_v18, %v1613_v2 }
 0x35d   : > { %v2601_v50 = vpop.permute.xlu1 %1592  ;;  %v1523_v34 = vpop.permute.xlu0 %1522 }
 0x35e   : > { %v1552_v10 = vrot.slane %v1523_v34, %v1539_v48  ;;  %v1621_v54 = vrot.slane %v2601_v50, %v2623_v59 }
 0x360   : > { %v1571_v4 = vsel %vm1420_vm10, %v1552_v10, %v1570_v51  ;;  %v1643_v33 = vsel %vm1418_vm9, %v1621_v54, %v1642_v25 }
 0x361   : > { %v1526_v40 = vpop.permute.xlu1 %1525  ;;  %v1456_v19 = vpop.permute.xlu0 %1455 }
 0x362   : > { %v1556_v5 = vrot.slane %v1526_v40, %v1539_v48  ;;  %v1487_v47 = vrot.slane %v1456_v19, %v2605_v9 }
 0x364   : > { %v1572_v38 = vsel %vm1422_vm11, %v1556_v5, %v1571_v4  ;;  %v1500_v26 = vsel %vm1424_vm12, %v1487_v47, %v1499_v20 }
 0x365   : > { %v1459_v53 = vpop.permute.xlu1 %1458  ;;  %v2608_v56 = vpop.permute.xlu0 %1595 }
 0x366   : > { %v1491_v46 = vrot.slane %v1459_v53, %v2605_v9  ;;  %v1625_v24 = vrot.slane %v2608_v56, %v2623_v59  ;;  %v1429_v53 = vsel %vm1428_vm14, %v1415_v12, %v1427_v8 }
 0x368   : > { %v1501_v3 = vsel %vm1426_vm13, %v1491_v46, %v1500_v26  ;;  %v1644_v57 = vsel %vm1420_vm10, %v1625_v24, %v1643_v33 }
 0x369   : > { %v1599_v13 = vpop.permute.xlu1 %1598  ;;  %v1529_v16 = vpop.permute.xlu0 %1528 }
 0x36a   : > { %v1560_v6 = vrot.slane %v1529_v16, %v1539_v48  ;;  %v1629_v23 = vrot.slane %v1599_v13, %v2623_v59 }
 0x36c   : > { %v1573_v39 = vsel %vm1424_vm12, %v1560_v6, %v1572_v38  ;;  %v1645_v40 = vsel %vm1422_vm11, %v1629_v23, %v1644_v57 }
 0x36d   : > { %v1532_v42 = vpop.permute.xlu1 %1531  ;;  %v1462_v63 = vpop.permute.xlu0 %1461 }
 0x36e   : > { %v1564_v31 = vrot.slane %v1532_v42, %v1539_v48  ;;  %v1495_v55 = vrot.slane %v1462_v63, %v2605_v9 }
 0x370   : > { %v1574_v36 = vsel %vm1426_vm13, %v1564_v31, %v1573_v39  ;;  %v1502_v50 = vsel %vm1428_vm14, %v1495_v55, %v1501_v3 }
 0x371   : > { %v1535_v28 = vpop.permute.xlu1 %1534  ;;  %v1602_v29 = vpop.permute.xlu0 %1601  ;;  %v1651_v11 = vsel %vm1650_vm15, %v1429_v53, %v1502_v50 }
 0x372   : > { %v1568_v32 = vrot.slane %v1535_v28, %v1539_v48  ;;  %v1633_v41 = vrot.slane %v1602_v29, %v2623_v59 }
 0x374   : > { %v1575_v19 = vsel %vm1428_vm14, %v1568_v32, %v1574_v36  ;;  %v1646_v56 = vsel %vm1424_vm12, %v1633_v41, %v1645_v40 }
 0x375   : > { %v1608_v34 = vpop.permute.xlu1 %1607  ;;  %v1605_v22 = vpop.permute.xlu0 %1604  ;;  %v1653_v30 = vsel %vm1652_vm0, %v1651_v11, %v1575_v19 }
 0x376   : > { %v1641_v9 = vrot.slane %v1608_v34, %v2623_v59  ;;  %v1637_v49 = vrot.slane %v1605_v22, %v2623_v59 }
 0x378   : > { %v1647_v1 = vsel %vm1426_vm13, %v1637_v49, %v1646_v56 }
 0x379   : > { %v1648_v52 = vsel %vm1428_vm14, %v1641_v9, %v1647_v1 }
 0x37a   : > { %v1655_v7 = vsel %vm1654_vm1, %v1653_v30, %v1648_v52 }
 0x37b   : > { %v1657_v48 = vadd.f32 %v1656_v17, %v1655_v7 }
 0x37d   : > { %1659 = vst.msk [vmem:[%s269_s28] sm:$0xff] %vm1658_vm2, %v1657_v48 }
 0x37e   : > { %1927 = shalt.err (!%p1924_p13)
}
 0x37f   : > { %s1928_s10 = scalar_lea.hbm %s1672_s16, 128  ;;  %s1932_s13 = scalar_lea.hbm %s2716_s5, 512 }
 0x380   : > { %p1929_p1 = scmp.ne.s32.totalorder %s1672_s16, %s1928_s10  ;;  %p1933_p3 = scmp.lt.s32.totalorder %s1672_s16, %s2716_s5 }
 0x381   : > { %p1934_p6 = scmp.lt.s32.totalorder %s1932_s13, %s1928_s10 }
 0x382   : > { %p1930_p0 = pnand %p1929_p1, %p2744_p12 }
 0x383   : > { %p1935_p10 = por %p1934_p6, %p1933_p3 }
 0x384   : > { %p1931_p2 = pneg %p1930_p0 }
 0x386   : > { %p1936_p11 = pnand %p1935_p10, %p1931_p2 }
 0x388   : > { %1939 = shalt.err (!%p1936_p11)
}
 0x389   : > { %1796 = dma.vmem_to_hbm [thread:$0]  (%p2744_p12), %s1675_s12, 128, %s1672_s16, %s1661_s8  }
 0x38a PF: > { %p1807_p4 = scmp.ge.s32.totalorder %s1978_s21, 2  ;;  %s1686_s26 = sand.u32 1, %s1966_s18  }
 0x38b   : > { %p2745_p5 = scmp.ne.s32.totalorder %s2730_s6, 0  ;;  %s1687_s28 = scalar_lea.sflag [#allocation4], %s1686_s26 }
 0x38d   : > { %p1803_p7 = pnand %p1807_p4, %p2745_p5 }
 0x38f   : > { %p1804_p8 = pneg %p1803_p7 }
 0x391   : > { %1961 = dma.done.wait (%p1804_p8), %s1687_s28, 128  }
 0x392   : > { %1963 = vsyncadd (%p1804_p8), %s1687_s28, 4294967168  ;;  %p18_p9 = scmp.ge.s32.totalorder %s2057_s24, 6   ;;  %s2746_s18 = smov %s1970_s19 }
 0x393   : > { %s2747_s19 = smov %s1974_s20  ;;  %s2748_s20 = smov %s2069_s27 }
 0x394   : > { %s2749_s21 = smov %s2057_s24  ;;  %20 = sbr.rel (!%p18_p9) target bundleno = 5 (0x5), region = 91 }
 0x399   :  { %1692 = vsyncpa [#allocation3], 1 }
 0x39a   :  { %1694 = vsyncpa [#allocation3 + $0x1], 1 }
 0x39b   :  { %1695 = vsyncpa [#allocation4], 1 }
 0x39c   :  { %1697 = vsyncpa [#allocation4 + $0x1], 1 }

</bundles_post_ra>
